<compile_context>
chip_gen: v5e
topology: v5e:2x2
jax: 0.10.0
libtpu: 0.0.40
codegen_flags: <defaults>
</compile_context>

<pallas_src>
import functools

import jax
import jax.numpy as jnp
from jax.experimental import pallas as pl
from jax.experimental.pallas import tpu as pltpu


def _round_up(x, m):
    return ((x + m - 1) // m) * m


def decision_maker_kernel(goal_ref, sae_ref,
                          wcat_ref, bcat_ref,
                          w1_ref, b1_ref, w2_ref, b2_ref,
                          out_ref, film_ref,
                          *, action_size, feature_size, atoms_pad):
    F = feature_size
    NP = atoms_pad

    # ---- per-(B,T)-row FiLM parameters, computed ONCE per row tile ------------
    # One fused (tm, F) @ (F, 4F) f32 matmul -> [gamma1+1 | beta1 | gamma2+1 | beta2]
    # (residual adds are folded into the gamma biases in the wrapper).
    g = goal_ref[...].astype(jnp.float32)                 # bf16 -> f32 (exact)
    gb = jnp.dot(g, wcat_ref[...], preferred_element_type=jnp.float32) + bcat_ref[...]
    g1, be1 = gb[:, 0 * F:1 * F], gb[:, 1 * F:2 * F]
    g2, be2 = gb[:, 2 * F:3 * F], gb[:, 3 * F:4 * F]
    # Fold the two FiLM+residual layers into a single affine map x = G*s + Bt:
    #   x2 = (gamma2+1)*((gamma1+1)*s + beta1) + beta2
    film_ref[:, :F] = g1 * g2                              # G
    film_ref[:, F:] = g2 * be1 + be2                       # Bt

    # Loop-invariant small operands hoisted out of the unrolled action loop.
    b1 = b1_ref[...]
    b2 = b2_ref[...]

    # action_size is a small static constant -> fully unrolled; every slice below
    # is a static, 128-lane-aligned slice (clean unmasked vld/vst, no relayouts).
    for a in range(action_size):
        s = sae_ref[:, a * F:(a + 1) * F].astype(jnp.float32)   # (tm, F)
        x = film_ref[:, :F] * s + film_ref[:, F:]               # FiLM1+res, FiLM2+res

        h = jnp.dot(x, w1_ref[...], preferred_element_type=jnp.float32) + b1
        h = jnp.maximum(h, 0.0)                 # (tm, Hp); zero-padded cols stay 0

        logits = jnp.dot(h, w2_ref[...], preferred_element_type=jnp.float32) + b2
        # Padded atom columns carry a -1e30 bias -> exp underflows to exactly 0,
        # so the softmax over the first n_atoms columns is exact.
        m = jnp.max(logits, axis=-1, keepdims=True)
        e = jnp.exp(logits - m)
        denom = jnp.sum(e, axis=-1, keepdims=True)
        inv = pl.reciprocal(denom, approx=True)
        inv = inv * (2.0 - denom * inv)         # one Newton step -> full f32 precision
        out_ref[:, a * NP:(a + 1) * NP] = (e * inv).astype(out_ref.dtype)


def decision_maker_c51(state_action_emb, goal, params, h_c=None, *,
                       action_size, feature_size, n_atoms=51, tm=512,
                       out_dtype=jnp.bfloat16, trim_atoms=True):
    """state_action_emb: (B, T, action_size*feature_size); goal: (B, T, feature_size)."""
    B, T = state_action_emb.shape[:2]
    A, F = action_size, feature_size
    assert F % 128 == 0, "feature_size must be a multiple of 128"
    H = F // 4
    Hp = _round_up(H, 128)            # lane-pad hidden dim
    NP = _round_up(n_atoms, 128)      # lane-pad atom dim

    (wg1, bg1, wb1, bb1, wg2, bg2, wb2, bb2, w1, b1, w2, b2) = params

    # Fuse the four FiLM projections; fold the residual (+1) into the gamma biases.
    # (Tiny one-time weight prep; in production preprocess params once.)
    wcat = jnp.concatenate([wg1, wb1, wg2, wb2], axis=1).astype(jnp.float32)      # (F, 4F)
    bcat = jnp.concatenate([bg1 + 1.0, bb1, bg2 + 1.0, bb2], axis=1).astype(jnp.float32)

    # Zero-pad ff1 (exact through ReLU); zero-pad w2 rows/cols, -1e30 bias on padded atoms.
    w1p = jnp.zeros((F, Hp), jnp.float32).at[:, :H].set(w1.astype(jnp.float32))
    b1p = jnp.zeros((1, Hp), jnp.float32).at[:, :H].set(b1.astype(jnp.float32))
    w2p = jnp.zeros((Hp, NP), jnp.float32).at[:H, :n_atoms].set(w2.astype(jnp.float32))
    b2p = jnp.full((1, NP), -1e30, jnp.float32).at[:, :n_atoms].set(b2.astype(jnp.float32))

    BT = B * T
    # Row tile: as big as `tm`, but small enough that the 1-D "parallel" grid has
    # >= 2 steps whenever BT allows it (so both v7x TensorCores get work).
    # 16-row granularity keeps bf16 sublane packing happy.
    tm_eff = max(16, min(tm, _round_up(pl.cdiv(BT, 2), 16)))
    num_blocks = pl.cdiv(BT, tm_eff)

    # No wrapper-side padding of the big inputs: Pallas clamps ragged last blocks.
    # Actions stay packed along the lane axis -> zero wrapper-side data movement.
    sae = state_action_emb.reshape(BT, A * F)
    goal2 = goal.reshape(BT, F)
    if sae.dtype != jnp.bfloat16:
        sae = sae.astype(jnp.bfloat16)      # callers should pass bf16 to skip this cast
    if goal2.dtype != jnp.bfloat16:
        goal2 = goal2.astype(jnp.bfloat16)

    row = lambda width: pl.BlockSpec((tm_eff, width), lambda i: (i, 0))
    full = lambda shape: pl.BlockSpec(shape, lambda i: (0, 0))  # constant block index
    # (constant-index weight blocks are "revisited" by the pipeline -> DMA'd once)

    kernel = functools.partial(decision_maker_kernel,
                               action_size=A, feature_size=F, atoms_pad=NP)

    out = pl.pallas_call(
        kernel,
        out_shape=jax.ShapeDtypeStruct((BT, A * NP), out_dtype),
        grid_spec=pltpu.PrefetchScalarGridSpec(
            num_scalar_prefetch=0,
            grid=(num_blocks,),
            in_specs=[
                row(F),                               # goal (bf16, one row per (B,T))
                row(A * F),                           # state-action embedding (bf16)
                full((F, 4 * F)), full((1, 4 * F)),   # fused FiLM weight / bias (f32)
                full((F, Hp)), full((1, Hp)),         # ff1 (hidden lane-padded)
                full((Hp, NP)), full((1, NP)),        # ff2 (atoms lane-padded, -1e30 bias)
            ],
            out_specs=pl.BlockSpec((tm_eff, A * NP), lambda i: (i, 0)),
            scratch_shapes=[pltpu.VMEM((tm_eff, 2 * F), jnp.float32)],  # folded FiLM G|Bt
        ),
        compiler_params=pltpu.CompilerParams(
            dimension_semantics=("parallel",),        # independent rows -> 2 TCs on v7x
            vmem_limit_bytes=32 * 1024 * 1024),
    )(goal2, sae, wcat, bcat, w1p, b1p, w2p, b2p)

    out = out.reshape(B, T, A, NP)
    if trim_atoms:
        # Extra HBM copy (~NP/n_atoms overhead on the output); pass trim_atoms=False
        # and index downstream to skip it.
        out = out[..., :n_atoms]
    return out, h_c


def _linear_params(key, fan_in, fan_out):
    """PyTorch nn.Linear-style uniform init, returned as (W^T, b[None, :])."""
    kw, kb = jax.random.split(key)
    bound = 1.0 / (fan_in ** 0.5)
    w = jax.random.uniform(kw, (fan_in, fan_out), jnp.float32, -bound, bound)
    b = jax.random.uniform(kb, (1, fan_out), jnp.float32, -bound, bound)
    return w, b


def _reference(state_action_emb, goal, params, *, action_size, feature_size, n_atoms=51):
    """Pure-JAX f32 reference mirroring the PyTorch forward (unfused, unpadded)."""
    (wg1, bg1, wb1, bb1, wg2, bg2, wb2, bb2, w1, b1, w2, b2) = params
    B, T = state_action_emb.shape[:2]
    sae = state_action_emb.reshape(B, T, action_size, feature_size)
    g = jnp.broadcast_to(goal[:, :, None, :], sae.shape)
    x = (g @ wg1 + bg1) * sae + (g @ wb1 + bb1) + sae
    x = (g @ wg2 + bg2) * x + (g @ wb2 + bb2) + x
    x = jnp.maximum(x @ w1 + b1, 0.0)
    logits = x @ w2 + b2
    return jax.nn.softmax(logits, axis=-1)


if __name__ == "__main__":
    # Small, module-consistent shapes (BT=32 -> 2-step "parallel" row grid).
    B, T = 4, 8
    feature_size = 128          # must be a multiple of 128 (and divisible by 4)
    action_size = 7
    n_atoms = 51

    key = jax.random.PRNGKey(0)
    k_sae, k_goal, k_p = jax.random.split(key, 3)
    keys = jax.random.split(k_p, 6)

    # Deterministic synthetic parameters (no checkpoint loading).
    wg1, bg1 = _linear_params(keys[0], feature_size, feature_size)     # film1.gamma
    wb1, bb1 = _linear_params(keys[1], feature_size, feature_size)     # film1.beta
    wg2, bg2 = _linear_params(keys[2], feature_size, feature_size)     # film2.gamma
    wb2, bb2 = _linear_params(keys[3], feature_size, feature_size)     # film2.beta
    w1, b1 = _linear_params(keys[4], feature_size, feature_size // 4)  # ff1
    w2, b2 = _linear_params(keys[5], feature_size // 4, n_atoms)       # ff2
    params = (wg1, bg1, wb1, bb1, wg2, bg2, wb2, bb2, w1, b1, w2, b2)

    # Upstream embeddings arrive in bf16 (what the kernel streams); the f32
    # reference is computed from the exact same (bf16-rounded) values.
    state_action_emb = jax.random.normal(
        k_sae, (B, T, action_size * feature_size), jnp.float32).astype(jnp.bfloat16)
    goal = jax.random.normal(
        k_goal, (B, T, feature_size), jnp.float32).astype(jnp.bfloat16)

    fn = jax.jit(functools.partial(
        decision_maker_c51, action_size=action_size,
        feature_size=feature_size, n_atoms=n_atoms))
    out, h_c = fn(state_action_emb, goal, params)
    out = jax.block_until_ready(out)

    ref = _reference(state_action_emb.astype(jnp.float32), goal.astype(jnp.float32),
                     params, action_size=action_size, feature_size=feature_size,
                     n_atoms=n_atoms)
    assert out.shape == (B, T, action_size, n_atoms)
    assert out.dtype == jnp.bfloat16
    assert h_c is None
    # bf16 output rounding dominates the tolerance (probabilities <= 1).
    assert jnp.allclose(out.astype(jnp.float32), ref, atol=4e-3, rtol=2e-2)

    print("KERNEL_OK")
</pallas_src>

<mosaic_0001>
module attributes {stable_mosaic.version = 11 : i64} {
  func.func @decision_maker_kernel(%arg0: i32, %arg1: memref<16x128xbf16, #tpu.memory_space<vmem>>, %arg2: memref<16x896xbf16, #tpu.memory_space<vmem>>, %arg3: memref<128x512xf32, #tpu.memory_space<vmem>>, %arg4: memref<1x512xf32, #tpu.memory_space<vmem>>, %arg5: memref<128x128xf32, #tpu.memory_space<vmem>>, %arg6: memref<1x128xf32, #tpu.memory_space<vmem>>, %arg7: memref<128x128xf32, #tpu.memory_space<vmem>>, %arg8: memref<1x128xf32, #tpu.memory_space<vmem>>, %arg9: memref<16x896xbf16, #tpu.memory_space<vmem>>, %arg10: memref<16x256xf32, #tpu.memory_space<vmem>>) attributes {dimension_semantics = [#tpu.dimension_semantics<parallel>], iteration_bounds = array<i64: 2>, scalar_prefetch = 0 : i64, scratch_operands = 1 : i64, tpu.core_type = #tpu.core_type<tc>, window_params = [{transform_indices = @transform_0, window_bounds = array<i64: 16, 128>}, {transform_indices = @transform_1, window_bounds = array<i64: 16, 896>}, {pipeline_mode = #tpu.pipeline_mode<synchronous>, transform_indices = @transform_2, window_bounds = array<i64: 128, 512>}, {pipeline_mode = #tpu.pipeline_mode<synchronous>, transform_indices = @transform_3, window_bounds = array<i64: 1, 512>}, {pipeline_mode = #tpu.pipeline_mode<synchronous>, transform_indices = @transform_4, window_bounds = array<i64: 128, 128>}, {pipeline_mode = #tpu.pipeline_mode<synchronous>, transform_indices = @transform_5, window_bounds = array<i64: 1, 128>}, {pipeline_mode = #tpu.pipeline_mode<synchronous>, transform_indices = @transform_6, window_bounds = array<i64: 128, 128>}, {pipeline_mode = #tpu.pipeline_mode<synchronous>, transform_indices = @transform_7, window_bounds = array<i64: 1, 128>}, {transform_indices = @transform_8, window_bounds = array<i64: 16, 896>}]} {
    %c0 = arith.constant 0 : index
    %c0_0 = arith.constant 0 : index
    %0 = vector.load %arg1[%c0, %c0_0] : memref<16x128xbf16, #tpu.memory_space<vmem>>, vector<16x128xbf16>
    %1 = arith.extf %0 : vector<16x128xbf16> to vector<16x128xf32>
    %c0_1 = arith.constant 0 : index
    %c0_2 = arith.constant 0 : index
    %2 = vector.load %arg3[%c0_1, %c0_2] : memref<128x512xf32, #tpu.memory_space<vmem>>, vector<128x512xf32>
    %cst = arith.constant dense<0.000000e+00> : vector<16x512xf32>
    %3 = tpu.matmul %1, %2, %cst {dimension_numbers = #tpu.dot_dimension_numbers<[1], [0], [0], [1], [0, 0, 1, 1], [], []>} : vector<16x128xf32>, vector<128x512xf32>, vector<16x512xf32> -> vector<16x512xf32>
    %c0_3 = arith.constant 0 : index
    %c0_4 = arith.constant 0 : index
    %4 = vector.load %arg4[%c0_3, %c0_4] : memref<1x512xf32, #tpu.memory_space<vmem>>, vector<1x512xf32>
    %5 = vector.broadcast %4 : vector<1x512xf32> to vector<16x512xf32>
    %6 = arith.addf %3, %5 : vector<16x512xf32>
    %7 = vector.extract_strided_slice %6 {offsets = [0, 0], sizes = [16, 128], strides = [1, 1]} : vector<16x512xf32> to vector<16x128xf32>
    %8 = vector.extract_strided_slice %6 {offsets = [0, 128], sizes = [16, 128], strides = [1, 1]} : vector<16x512xf32> to vector<16x128xf32>
    %9 = vector.extract_strided_slice %6 {offsets = [0, 256], sizes = [16, 128], strides = [1, 1]} : vector<16x512xf32> to vector<16x128xf32>
    %10 = vector.extract_strided_slice %6 {offsets = [0, 384], sizes = [16, 128], strides = [1, 1]} : vector<16x512xf32> to vector<16x128xf32>
    %11 = arith.mulf %7, %9 : vector<16x128xf32>
    %c0_5 = arith.constant 0 : index
    %c0_6 = arith.constant 0 : index
    %12 = vector.load %arg10[%c0_5, %c0_6] : memref<16x256xf32, #tpu.memory_space<vmem>>, vector<16x128xf32>
    tpu.vector_store %arg10[%c0_5, %c0_6], %11 {strides = array<i32>} : memref<16x256xf32, #tpu.memory_space<vmem>>, vector<16x128xf32>,
    %13 = arith.mulf %9, %8 : vector<16x128xf32>
    %14 = arith.addf %13, %10 : vector<16x128xf32>
    %c0_7 = arith.constant 0 : index
    %c128 = arith.constant 128 : index
    %15 = vector.load %arg10[%c0_7, %c128] : memref<16x256xf32, #tpu.memory_space<vmem>>, vector<16x128xf32>
    tpu.vector_store %arg10[%c0_7, %c128], %14 {strides = array<i32>} : memref<16x256xf32, #tpu.memory_space<vmem>>, vector<16x128xf32>,
    %c0_8 = arith.constant 0 : index
    %c0_9 = arith.constant 0 : index
    %16 = vector.load %arg6[%c0_8, %c0_9] : memref<1x128xf32, #tpu.memory_space<vmem>>, vector<1x128xf32>
    %c0_10 = arith.constant 0 : index
    %c0_11 = arith.constant 0 : index
    %17 = vector.load %arg8[%c0_10, %c0_11] : memref<1x128xf32, #tpu.memory_space<vmem>>, vector<1x128xf32>
    %c0_12 = arith.constant 0 : index
    %c0_13 = arith.constant 0 : index
    %18 = vector.load %arg2[%c0_12, %c0_13] : memref<16x896xbf16, #tpu.memory_space<vmem>>, vector<16x128xbf16>
    %19 = arith.extf %18 : vector<16x128xbf16> to vector<16x128xf32>
    %c0_14 = arith.constant 0 : index
    %c0_15 = arith.constant 0 : index
    %20 = vector.load %arg10[%c0_14, %c0_15] : memref<16x256xf32, #tpu.memory_space<vmem>>, vector<16x128xf32>
    %21 = arith.mulf %20, %19 : vector<16x128xf32>
    %c0_16 = arith.constant 0 : index
    %c128_17 = arith.constant 128 : index
    %22 = vector.load %arg10[%c0_16, %c128_17] : memref<16x256xf32, #tpu.memory_space<vmem>>, vector<16x128xf32>
    %23 = arith.addf %21, %22 : vector<16x128xf32>
    %c0_18 = arith.constant 0 : index
    %c0_19 = arith.constant 0 : index
    %24 = vector.load %arg5[%c0_18, %c0_19] : memref<128x128xf32, #tpu.memory_space<vmem>>, vector<128x128xf32>
    %cst_20 = arith.constant dense<0.000000e+00> : vector<16x128xf32>
    %25 = tpu.matmul %23, %24, %cst_20 {dimension_numbers = #tpu.dot_dimension_numbers<[1], [0], [0], [1], [0, 0, 1, 1], [], []>} : vector<16x128xf32>, vector<128x128xf32>, vector<16x128xf32> -> vector<16x128xf32>
    %26 = vector.broadcast %16 : vector<1x128xf32> to vector<16x128xf32>
    %27 = arith.addf %25, %26 : vector<16x128xf32>
    %cst_21 = arith.constant 0.000000e+00 : f32
    %28 = vector.broadcast %cst_21 : f32 to vector<16x128xf32>
    %29 = arith.maximumf %27, %28 : vector<16x128xf32>
    %c0_22 = arith.constant 0 : index
    %c0_23 = arith.constant 0 : index
    %30 = vector.load %arg7[%c0_22, %c0_23] : memref<128x128xf32, #tpu.memory_space<vmem>>, vector<128x128xf32>
    %cst_24 = arith.constant dense<0.000000e+00> : vector<16x128xf32>
    %31 = tpu.matmul %29, %30, %cst_24 {dimension_numbers = #tpu.dot_dimension_numbers<[1], [0], [0], [1], [0, 0, 1, 1], [], []>} : vector<16x128xf32>, vector<128x128xf32>, vector<16x128xf32> -> vector<16x128xf32>
    %32 = vector.broadcast %17 : vector<1x128xf32> to vector<16x128xf32>
    %33 = arith.addf %31, %32 : vector<16x128xf32>
    %cst_25 = arith.constant dense<0xFF800000> : vector<16xf32>
    %34 = vector.multi_reduction <maximumf>, %33, %cst_25 [1] : vector<16x128xf32> to vector<16xf32>
    %35 = vector.shape_cast %34 : vector<16xf32> to vector<16x1xf32>
    %36 = vector.broadcast %35 : vector<16x1xf32> to vector<16x128xf32>
    %37 = arith.subf %33, %36 : vector<16x128xf32>
    %38 = math.exp %37 : vector<16x128xf32>
    %cst_26 = arith.constant dense<0.000000e+00> : vector<16xf32>
    %39 = vector.multi_reduction <add>, %38, %cst_26 [1] : vector<16x128xf32> to vector<16xf32>
    %40 = vector.shape_cast %39 : vector<16xf32> to vector<16x1xf32>
    %41 = tpu.reciprocal %40 {approx = true} : vector<16x1xf32> -> vector<16x1xf32>
    %42 = arith.mulf %40, %41 : vector<16x1xf32>
    %cst_27 = arith.constant 2.000000e+00 : f32
    %43 = vector.broadcast %cst_27 : f32 to vector<16x1xf32>
    %44 = arith.subf %43, %42 : vector<16x1xf32>
    %45 = arith.mulf %41, %44 : vector<16x1xf32>
    %46 = vector.broadcast %45 : vector<16x1xf32> to vector<16x128xf32>
    %47 = arith.mulf %38, %46 : vector<16x128xf32>
    %48 = arith.truncf %47 : vector<16x128xf32> to vector<16x128xbf16>
    %c0_28 = arith.constant 0 : index
    %c0_29 = arith.constant 0 : index
    %49 = vector.load %arg9[%c0_28, %c0_29] : memref<16x896xbf16, #tpu.memory_space<vmem>>, vector<16x128xbf16>
    tpu.vector_store %arg9[%c0_28, %c0_29], %48 {strides = array<i32>} : memref<16x896xbf16, #tpu.memory_space<vmem>>, vector<16x128xbf16>,
    %c0_30 = arith.constant 0 : index
    %c128_31 = arith.constant 128 : index
    %50 = vector.load %arg2[%c0_30, %c128_31] : memref<16x896xbf16, #tpu.memory_space<vmem>>, vector<16x128xbf16>
    %51 = arith.extf %50 : vector<16x128xbf16> to vector<16x128xf32>
    %c0_32 = arith.constant 0 : index
    %c0_33 = arith.constant 0 : index
    %52 = vector.load %arg10[%c0_32, %c0_33] : memref<16x256xf32, #tpu.memory_space<vmem>>, vector<16x128xf32>
    %53 = arith.mulf %52, %51 : vector<16x128xf32>
    %c0_34 = arith.constant 0 : index
    %c128_35 = arith.constant 128 : index
    %54 = vector.load %arg10[%c0_34, %c128_35] : memref<16x256xf32, #tpu.memory_space<vmem>>, vector<16x128xf32>
    %55 = arith.addf %53, %54 : vector<16x128xf32>
    %c0_36 = arith.constant 0 : index
    %c0_37 = arith.constant 0 : index
    %56 = vector.load %arg5[%c0_36, %c0_37] : memref<128x128xf32, #tpu.memory_space<vmem>>, vector<128x128xf32>
    %cst_38 = arith.constant dense<0.000000e+00> : vector<16x128xf32>
    %57 = tpu.matmul %55, %56, %cst_38 {dimension_numbers = #tpu.dot_dimension_numbers<[1], [0], [0], [1], [0, 0, 1, 1], [], []>} : vector<16x128xf32>, vector<128x128xf32>, vector<16x128xf32> -> vector<16x128xf32>
    %58 = vector.broadcast %16 : vector<1x128xf32> to vector<16x128xf32>
    %59 = arith.addf %57, %58 : vector<16x128xf32>
    %cst_39 = arith.constant 0.000000e+00 : f32
    %60 = vector.broadcast %cst_39 : f32 to vector<16x128xf32>
    %61 = arith.maximumf %59, %60 : vector<16x128xf32>
    %c0_40 = arith.constant 0 : index
    %c0_41 = arith.constant 0 : index
    %62 = vector.load %arg7[%c0_40, %c0_41] : memref<128x128xf32, #tpu.memory_space<vmem>>, vector<128x128xf32>
    %cst_42 = arith.constant dense<0.000000e+00> : vector<16x128xf32>
    %63 = tpu.matmul %61, %62, %cst_42 {dimension_numbers = #tpu.dot_dimension_numbers<[1], [0], [0], [1], [0, 0, 1, 1], [], []>} : vector<16x128xf32>, vector<128x128xf32>, vector<16x128xf32> -> vector<16x128xf32>
    %64 = vector.broadcast %17 : vector<1x128xf32> to vector<16x128xf32>
    %65 = arith.addf %63, %64 : vector<16x128xf32>
    %cst_43 = arith.constant dense<0xFF800000> : vector<16xf32>
    %66 = vector.multi_reduction <maximumf>, %65, %cst_43 [1] : vector<16x128xf32> to vector<16xf32>
    %67 = vector.shape_cast %66 : vector<16xf32> to vector<16x1xf32>
    %68 = vector.broadcast %67 : vector<16x1xf32> to vector<16x128xf32>
    %69 = arith.subf %65, %68 : vector<16x128xf32>
    %70 = math.exp %69 : vector<16x128xf32>
    %cst_44 = arith.constant dense<0.000000e+00> : vector<16xf32>
    %71 = vector.multi_reduction <add>, %70, %cst_44 [1] : vector<16x128xf32> to vector<16xf32>
    %72 = vector.shape_cast %71 : vector<16xf32> to vector<16x1xf32>
    %73 = tpu.reciprocal %72 {approx = true} : vector<16x1xf32> -> vector<16x1xf32>
    %74 = arith.mulf %72, %73 : vector<16x1xf32>
    %cst_45 = arith.constant 2.000000e+00 : f32
    %75 = vector.broadcast %cst_45 : f32 to vector<16x1xf32>
    %76 = arith.subf %75, %74 : vector<16x1xf32>
    %77 = arith.mulf %73, %76 : vector<16x1xf32>
    %78 = vector.broadcast %77 : vector<16x1xf32> to vector<16x128xf32>
    %79 = arith.mulf %70, %78 : vector<16x128xf32>
    %80 = arith.truncf %79 : vector<16x128xf32> to vector<16x128xbf16>
    %c0_46 = arith.constant 0 : index
    %c128_47 = arith.constant 128 : index
    %81 = vector.load %arg9[%c0_46, %c128_47] : memref<16x896xbf16, #tpu.memory_space<vmem>>, vector<16x128xbf16>
    tpu.vector_store %arg9[%c0_46, %c128_47], %80 {strides = array<i32>} : memref<16x896xbf16, #tpu.memory_space<vmem>>, vector<16x128xbf16>,
    %c0_48 = arith.constant 0 : index
    %c256 = arith.constant 256 : index
    %82 = vector.load %arg2[%c0_48, %c256] : memref<16x896xbf16, #tpu.memory_space<vmem>>, vector<16x128xbf16>
    %83 = arith.extf %82 : vector<16x128xbf16> to vector<16x128xf32>
    %c0_49 = arith.constant 0 : index
    %c0_50 = arith.constant 0 : index
    %84 = vector.load %arg10[%c0_49, %c0_50] : memref<16x256xf32, #tpu.memory_space<vmem>>, vector<16x128xf32>
    %85 = arith.mulf %84, %83 : vector<16x128xf32>
    %c0_51 = arith.constant 0 : index
    %c128_52 = arith.constant 128 : index
    %86 = vector.load %arg10[%c0_51, %c128_52] : memref<16x256xf32, #tpu.memory_space<vmem>>, vector<16x128xf32>
    %87 = arith.addf %85, %86 : vector<16x128xf32>
    %c0_53 = arith.constant 0 : index
    %c0_54 = arith.constant 0 : index
    %88 = vector.load %arg5[%c0_53, %c0_54] : memref<128x128xf32, #tpu.memory_space<vmem>>, vector<128x128xf32>
    %cst_55 = arith.constant dense<0.000000e+00> : vector<16x128xf32>
    %89 = tpu.matmul %87, %88, %cst_55 {dimension_numbers = #tpu.dot_dimension_numbers<[1], [0], [0], [1], [0, 0, 1, 1], [], []>} : vector<16x128xf32>, vector<128x128xf32>, vector<16x128xf32> -> vector<16x128xf32>
    %90 = vector.broadcast %16 : vector<1x128xf32> to vector<16x128xf32>
    %91 = arith.addf %89, %90 : vector<16x128xf32>
    %cst_56 = arith.constant 0.000000e+00 : f32
    %92 = vector.broadcast %cst_56 : f32 to vector<16x128xf32>
    %93 = arith.maximumf %91, %92 : vector<16x128xf32>
    %c0_57 = arith.constant 0 : index
    %c0_58 = arith.constant 0 : index
    %94 = vector.load %arg7[%c0_57, %c0_58] : memref<128x128xf32, #tpu.memory_space<vmem>>, vector<128x128xf32>
    %cst_59 = arith.constant dense<0.000000e+00> : vector<16x128xf32>
    %95 = tpu.matmul %93, %94, %cst_59 {dimension_numbers = #tpu.dot_dimension_numbers<[1], [0], [0], [1], [0, 0, 1, 1], [], []>} : vector<16x128xf32>, vector<128x128xf32>, vector<16x128xf32> -> vector<16x128xf32>
    %96 = vector.broadcast %17 : vector<1x128xf32> to vector<16x128xf32>
    %97 = arith.addf %95, %96 : vector<16x128xf32>
    %cst_60 = arith.constant dense<0xFF800000> : vector<16xf32>
    %98 = vector.multi_reduction <maximumf>, %97, %cst_60 [1] : vector<16x128xf32> to vector<16xf32>
    %99 = vector.shape_cast %98 : vector<16xf32> to vector<16x1xf32>
    %100 = vector.broadcast %99 : vector<16x1xf32> to vector<16x128xf32>
    %101 = arith.subf %97, %100 : vector<16x128xf32>
    %102 = math.exp %101 : vector<16x128xf32>
    %cst_61 = arith.constant dense<0.000000e+00> : vector<16xf32>
    %103 = vector.multi_reduction <add>, %102, %cst_61 [1] : vector<16x128xf32> to vector<16xf32>
    %104 = vector.shape_cast %103 : vector<16xf32> to vector<16x1xf32>
    %105 = tpu.reciprocal %104 {approx = true} : vector<16x1xf32> -> vector<16x1xf32>
    %106 = arith.mulf %104, %105 : vector<16x1xf32>
    %cst_62 = arith.constant 2.000000e+00 : f32
    %107 = vector.broadcast %cst_62 : f32 to vector<16x1xf32>
    %108 = arith.subf %107, %106 : vector<16x1xf32>
    %109 = arith.mulf %105, %108 : vector<16x1xf32>
    %110 = vector.broadcast %109 : vector<16x1xf32> to vector<16x128xf32>
    %111 = arith.mulf %102, %110 : vector<16x128xf32>
    %112 = arith.truncf %111 : vector<16x128xf32> to vector<16x128xbf16>
    %c0_63 = arith.constant 0 : index
    %c256_64 = arith.constant 256 : index
    %113 = vector.load %arg9[%c0_63, %c256_64] : memref<16x896xbf16, #tpu.memory_space<vmem>>, vector<16x128xbf16>
    tpu.vector_store %arg9[%c0_63, %c256_64], %112 {strides = array<i32>} : memref<16x896xbf16, #tpu.memory_space<vmem>>, vector<16x128xbf16>,
    %c0_65 = arith.constant 0 : index
    %c384 = arith.constant 384 : index
    %114 = vector.load %arg2[%c0_65, %c384] : memref<16x896xbf16, #tpu.memory_space<vmem>>, vector<16x128xbf16>
    %115 = arith.extf %114 : vector<16x128xbf16> to vector<16x128xf32>
    %c0_66 = arith.constant 0 : index
    %c0_67 = arith.constant 0 : index
    %116 = vector.load %arg10[%c0_66, %c0_67] : memref<16x256xf32, #tpu.memory_space<vmem>>, vector<16x128xf32>
    %117 = arith.mulf %116, %115 : vector<16x128xf32>
    %c0_68 = arith.constant 0 : index
    %c128_69 = arith.constant 128 : index
    %118 = vector.load %arg10[%c0_68, %c128_69] : memref<16x256xf32, #tpu.memory_space<vmem>>, vector<16x128xf32>
    %119 = arith.addf %117, %118 : vector<16x128xf32>
    %c0_70 = arith.constant 0 : index
    %c0_71 = arith.constant 0 : index
    %120 = vector.load %arg5[%c0_70, %c0_71] : memref<128x128xf32, #tpu.memory_space<vmem>>, vector<128x128xf32>
    %cst_72 = arith.constant dense<0.000000e+00> : vector<16x128xf32>
    %121 = tpu.matmul %119, %120, %cst_72 {dimension_numbers = #tpu.dot_dimension_numbers<[1], [0], [0], [1], [0, 0, 1, 1], [], []>} : vector<16x128xf32>, vector<128x128xf32>, vector<16x128xf32> -> vector<16x128xf32>
    %122 = vector.broadcast %16 : vector<1x128xf32> to vector<16x128xf32>
    %123 = arith.addf %121, %122 : vector<16x128xf32>
    %cst_73 = arith.constant 0.000000e+00 : f32
    %124 = vector.broadcast %cst_73 : f32 to vector<16x128xf32>
    %125 = arith.maximumf %123, %124 : vector<16x128xf32>
    %c0_74 = arith.constant 0 : index
    %c0_75 = arith.constant 0 : index
    %126 = vector.load %arg7[%c0_74, %c0_75] : memref<128x128xf32, #tpu.memory_space<vmem>>, vector<128x128xf32>
    %cst_76 = arith.constant dense<0.000000e+00> : vector<16x128xf32>
    %127 = tpu.matmul %125, %126, %cst_76 {dimension_numbers = #tpu.dot_dimension_numbers<[1], [0], [0], [1], [0, 0, 1, 1], [], []>} : vector<16x128xf32>, vector<128x128xf32>, vector<16x128xf32> -> vector<16x128xf32>
    %128 = vector.broadcast %17 : vector<1x128xf32> to vector<16x128xf32>
    %129 = arith.addf %127, %128 : vector<16x128xf32>
    %cst_77 = arith.constant dense<0xFF800000> : vector<16xf32>
    %130 = vector.multi_reduction <maximumf>, %129, %cst_77 [1] : vector<16x128xf32> to vector<16xf32>
    %131 = vector.shape_cast %130 : vector<16xf32> to vector<16x1xf32>
    %132 = vector.broadcast %131 : vector<16x1xf32> to vector<16x128xf32>
    %133 = arith.subf %129, %132 : vector<16x128xf32>
    %134 = math.exp %133 : vector<16x128xf32>
    %cst_78 = arith.constant dense<0.000000e+00> : vector<16xf32>
    %135 = vector.multi_reduction <add>, %134, %cst_78 [1] : vector<16x128xf32> to vector<16xf32>
    %136 = vector.shape_cast %135 : vector<16xf32> to vector<16x1xf32>
    %137 = tpu.reciprocal %136 {approx = true} : vector<16x1xf32> -> vector<16x1xf32>
    %138 = arith.mulf %136, %137 : vector<16x1xf32>
    %cst_79 = arith.constant 2.000000e+00 : f32
    %139 = vector.broadcast %cst_79 : f32 to vector<16x1xf32>
    %140 = arith.subf %139, %138 : vector<16x1xf32>
    %141 = arith.mulf %137, %140 : vector<16x1xf32>
    %142 = vector.broadcast %141 : vector<16x1xf32> to vector<16x128xf32>
    %143 = arith.mulf %134, %142 : vector<16x128xf32>
    %144 = arith.truncf %143 : vector<16x128xf32> to vector<16x128xbf16>
    %c0_80 = arith.constant 0 : index
    %c384_81 = arith.constant 384 : index
    %145 = vector.load %arg9[%c0_80, %c384_81] : memref<16x896xbf16, #tpu.memory_space<vmem>>, vector<16x128xbf16>
    tpu.vector_store %arg9[%c0_80, %c384_81], %144 {strides = array<i32>} : memref<16x896xbf16, #tpu.memory_space<vmem>>, vector<16x128xbf16>,
    %c0_82 = arith.constant 0 : index
    %c512 = arith.constant 512 : index
    %146 = vector.load %arg2[%c0_82, %c512] : memref<16x896xbf16, #tpu.memory_space<vmem>>, vector<16x128xbf16>
    %147 = arith.extf %146 : vector<16x128xbf16> to vector<16x128xf32>
    %c0_83 = arith.constant 0 : index
    %c0_84 = arith.constant 0 : index
    %148 = vector.load %arg10[%c0_83, %c0_84] : memref<16x256xf32, #tpu.memory_space<vmem>>, vector<16x128xf32>
    %149 = arith.mulf %148, %147 : vector<16x128xf32>
    %c0_85 = arith.constant 0 : index
    %c128_86 = arith.constant 128 : index
    %150 = vector.load %arg10[%c0_85, %c128_86] : memref<16x256xf32, #tpu.memory_space<vmem>>, vector<16x128xf32>
    %151 = arith.addf %149, %150 : vector<16x128xf32>
    %c0_87 = arith.constant 0 : index
    %c0_88 = arith.constant 0 : index
    %152 = vector.load %arg5[%c0_87, %c0_88] : memref<128x128xf32, #tpu.memory_space<vmem>>, vector<128x128xf32>
    %cst_89 = arith.constant dense<0.000000e+00> : vector<16x128xf32>
    %153 = tpu.matmul %151, %152, %cst_89 {dimension_numbers = #tpu.dot_dimension_numbers<[1], [0], [0], [1], [0, 0, 1, 1], [], []>} : vector<16x128xf32>, vector<128x128xf32>, vector<16x128xf32> -> vector<16x128xf32>
    %154 = vector.broadcast %16 : vector<1x128xf32> to vector<16x128xf32>
    %155 = arith.addf %153, %154 : vector<16x128xf32>
    %cst_90 = arith.constant 0.000000e+00 : f32
    %156 = vector.broadcast %cst_90 : f32 to vector<16x128xf32>
    %157 = arith.maximumf %155, %156 : vector<16x128xf32>
    %c0_91 = arith.constant 0 : index
    %c0_92 = arith.constant 0 : index
    %158 = vector.load %arg7[%c0_91, %c0_92] : memref<128x128xf32, #tpu.memory_space<vmem>>, vector<128x128xf32>
    %cst_93 = arith.constant dense<0.000000e+00> : vector<16x128xf32>
    %159 = tpu.matmul %157, %158, %cst_93 {dimension_numbers = #tpu.dot_dimension_numbers<[1], [0], [0], [1], [0, 0, 1, 1], [], []>} : vector<16x128xf32>, vector<128x128xf32>, vector<16x128xf32> -> vector<16x128xf32>
    %160 = vector.broadcast %17 : vector<1x128xf32> to vector<16x128xf32>
    %161 = arith.addf %159, %160 : vector<16x128xf32>
    %cst_94 = arith.constant dense<0xFF800000> : vector<16xf32>
    %162 = vector.multi_reduction <maximumf>, %161, %cst_94 [1] : vector<16x128xf32> to vector<16xf32>
    %163 = vector.shape_cast %162 : vector<16xf32> to vector<16x1xf32>
    %164 = vector.broadcast %163 : vector<16x1xf32> to vector<16x128xf32>
    %165 = arith.subf %161, %164 : vector<16x128xf32>
    %166 = math.exp %165 : vector<16x128xf32>
    %cst_95 = arith.constant dense<0.000000e+00> : vector<16xf32>
    %167 = vector.multi_reduction <add>, %166, %cst_95 [1] : vector<16x128xf32> to vector<16xf32>
    %168 = vector.shape_cast %167 : vector<16xf32> to vector<16x1xf32>
    %169 = tpu.reciprocal %168 {approx = true} : vector<16x1xf32> -> vector<16x1xf32>
    %170 = arith.mulf %168, %169 : vector<16x1xf32>
    %cst_96 = arith.constant 2.000000e+00 : f32
    %171 = vector.broadcast %cst_96 : f32 to vector<16x1xf32>
    %172 = arith.subf %171, %170 : vector<16x1xf32>
    %173 = arith.mulf %169, %172 : vector<16x1xf32>
    %174 = vector.broadcast %173 : vector<16x1xf32> to vector<16x128xf32>
    %175 = arith.mulf %166, %174 : vector<16x128xf32>
    %176 = arith.truncf %175 : vector<16x128xf32> to vector<16x128xbf16>
    %c0_97 = arith.constant 0 : index
    %c512_98 = arith.constant 512 : index
    %177 = vector.load %arg9[%c0_97, %c512_98] : memref<16x896xbf16, #tpu.memory_space<vmem>>, vector<16x128xbf16>
    tpu.vector_store %arg9[%c0_97, %c512_98], %176 {strides = array<i32>} : memref<16x896xbf16, #tpu.memory_space<vmem>>, vector<16x128xbf16>,
    %c0_99 = arith.constant 0 : index
    %c640 = arith.constant 640 : index
    %178 = vector.load %arg2[%c0_99, %c640] : memref<16x896xbf16, #tpu.memory_space<vmem>>, vector<16x128xbf16>
    %179 = arith.extf %178 : vector<16x128xbf16> to vector<16x128xf32>
    %c0_100 = arith.constant 0 : index
    %c0_101 = arith.constant 0 : index
    %180 = vector.load %arg10[%c0_100, %c0_101] : memref<16x256xf32, #tpu.memory_space<vmem>>, vector<16x128xf32>
    %181 = arith.mulf %180, %179 : vector<16x128xf32>
    %c0_102 = arith.constant 0 : index
    %c128_103 = arith.constant 128 : index
    %182 = vector.load %arg10[%c0_102, %c128_103] : memref<16x256xf32, #tpu.memory_space<vmem>>, vector<16x128xf32>
    %183 = arith.addf %181, %182 : vector<16x128xf32>
    %c0_104 = arith.constant 0 : index
    %c0_105 = arith.constant 0 : index
    %184 = vector.load %arg5[%c0_104, %c0_105] : memref<128x128xf32, #tpu.memory_space<vmem>>, vector<128x128xf32>
    %cst_106 = arith.constant dense<0.000000e+00> : vector<16x128xf32>
    %185 = tpu.matmul %183, %184, %cst_106 {dimension_numbers = #tpu.dot_dimension_numbers<[1], [0], [0], [1], [0, 0, 1, 1], [], []>} : vector<16x128xf32>, vector<128x128xf32>, vector<16x128xf32> -> vector<16x128xf32>
    %186 = vector.broadcast %16 : vector<1x128xf32> to vector<16x128xf32>
    %187 = arith.addf %185, %186 : vector<16x128xf32>
    %cst_107 = arith.constant 0.000000e+00 : f32
    %188 = vector.broadcast %cst_107 : f32 to vector<16x128xf32>
    %189 = arith.maximumf %187, %188 : vector<16x128xf32>
    %c0_108 = arith.constant 0 : index
    %c0_109 = arith.constant 0 : index
    %190 = vector.load %arg7[%c0_108, %c0_109] : memref<128x128xf32, #tpu.memory_space<vmem>>, vector<128x128xf32>
    %cst_110 = arith.constant dense<0.000000e+00> : vector<16x128xf32>
    %191 = tpu.matmul %189, %190, %cst_110 {dimension_numbers = #tpu.dot_dimension_numbers<[1], [0], [0], [1], [0, 0, 1, 1], [], []>} : vector<16x128xf32>, vector<128x128xf32>, vector<16x128xf32> -> vector<16x128xf32>
    %192 = vector.broadcast %17 : vector<1x128xf32> to vector<16x128xf32>
    %193 = arith.addf %191, %192 : vector<16x128xf32>
    %cst_111 = arith.constant dense<0xFF800000> : vector<16xf32>
    %194 = vector.multi_reduction <maximumf>, %193, %cst_111 [1] : vector<16x128xf32> to vector<16xf32>
    %195 = vector.shape_cast %194 : vector<16xf32> to vector<16x1xf32>
    %196 = vector.broadcast %195 : vector<16x1xf32> to vector<16x128xf32>
    %197 = arith.subf %193, %196 : vector<16x128xf32>
    %198 = math.exp %197 : vector<16x128xf32>
    %cst_112 = arith.constant dense<0.000000e+00> : vector<16xf32>
    %199 = vector.multi_reduction <add>, %198, %cst_112 [1] : vector<16x128xf32> to vector<16xf32>
    %200 = vector.shape_cast %199 : vector<16xf32> to vector<16x1xf32>
    %201 = tpu.reciprocal %200 {approx = true} : vector<16x1xf32> -> vector<16x1xf32>
    %202 = arith.mulf %200, %201 : vector<16x1xf32>
    %cst_113 = arith.constant 2.000000e+00 : f32
    %203 = vector.broadcast %cst_113 : f32 to vector<16x1xf32>
    %204 = arith.subf %203, %202 : vector<16x1xf32>
    %205 = arith.mulf %201, %204 : vector<16x1xf32>
    %206 = vector.broadcast %205 : vector<16x1xf32> to vector<16x128xf32>
    %207 = arith.mulf %198, %206 : vector<16x128xf32>
    %208 = arith.truncf %207 : vector<16x128xf32> to vector<16x128xbf16>
    %c0_114 = arith.constant 0 : index
    %c640_115 = arith.constant 640 : index
    %209 = vector.load %arg9[%c0_114, %c640_115] : memref<16x896xbf16, #tpu.memory_space<vmem>>, vector<16x128xbf16>
    tpu.vector_store %arg9[%c0_114, %c640_115], %208 {strides = array<i32>} : memref<16x896xbf16, #tpu.memory_space<vmem>>, vector<16x128xbf16>,
    %c0_116 = arith.constant 0 : index
    %c768 = arith.constant 768 : index
    %210 = vector.load %arg2[%c0_116, %c768] : memref<16x896xbf16, #tpu.memory_space<vmem>>, vector<16x128xbf16>
    %211 = arith.extf %210 : vector<16x128xbf16> to vector<16x128xf32>
    %c0_117 = arith.constant 0 : index
    %c0_118 = arith.constant 0 : index
    %212 = vector.load %arg10[%c0_117, %c0_118] : memref<16x256xf32, #tpu.memory_space<vmem>>, vector<16x128xf32>
    %213 = arith.mulf %212, %211 : vector<16x128xf32>
    %c0_119 = arith.constant 0 : index
    %c128_120 = arith.constant 128 : index
    %214 = vector.load %arg10[%c0_119, %c128_120] : memref<16x256xf32, #tpu.memory_space<vmem>>, vector<16x128xf32>
    %215 = arith.addf %213, %214 : vector<16x128xf32>
    %c0_121 = arith.constant 0 : index
    %c0_122 = arith.constant 0 : index
    %216 = vector.load %arg5[%c0_121, %c0_122] : memref<128x128xf32, #tpu.memory_space<vmem>>, vector<128x128xf32>
    %cst_123 = arith.constant dense<0.000000e+00> : vector<16x128xf32>
    %217 = tpu.matmul %215, %216, %cst_123 {dimension_numbers = #tpu.dot_dimension_numbers<[1], [0], [0], [1], [0, 0, 1, 1], [], []>} : vector<16x128xf32>, vector<128x128xf32>, vector<16x128xf32> -> vector<16x128xf32>
    %218 = vector.broadcast %16 : vector<1x128xf32> to vector<16x128xf32>
    %219 = arith.addf %217, %218 : vector<16x128xf32>
    %cst_124 = arith.constant 0.000000e+00 : f32
    %220 = vector.broadcast %cst_124 : f32 to vector<16x128xf32>
    %221 = arith.maximumf %219, %220 : vector<16x128xf32>
    %c0_125 = arith.constant 0 : index
    %c0_126 = arith.constant 0 : index
    %222 = vector.load %arg7[%c0_125, %c0_126] : memref<128x128xf32, #tpu.memory_space<vmem>>, vector<128x128xf32>
    %cst_127 = arith.constant dense<0.000000e+00> : vector<16x128xf32>
    %223 = tpu.matmul %221, %222, %cst_127 {dimension_numbers = #tpu.dot_dimension_numbers<[1], [0], [0], [1], [0, 0, 1, 1], [], []>} : vector<16x128xf32>, vector<128x128xf32>, vector<16x128xf32> -> vector<16x128xf32>
    %224 = vector.broadcast %17 : vector<1x128xf32> to vector<16x128xf32>
    %225 = arith.addf %223, %224 : vector<16x128xf32>
    %cst_128 = arith.constant dense<0xFF800000> : vector<16xf32>
    %226 = vector.multi_reduction <maximumf>, %225, %cst_128 [1] : vector<16x128xf32> to vector<16xf32>
    %227 = vector.shape_cast %226 : vector<16xf32> to vector<16x1xf32>
    %228 = vector.broadcast %227 : vector<16x1xf32> to vector<16x128xf32>
    %229 = arith.subf %225, %228 : vector<16x128xf32>
    %230 = math.exp %229 : vector<16x128xf32>
    %cst_129 = arith.constant dense<0.000000e+00> : vector<16xf32>
    %231 = vector.multi_reduction <add>, %230, %cst_129 [1] : vector<16x128xf32> to vector<16xf32>
    %232 = vector.shape_cast %231 : vector<16xf32> to vector<16x1xf32>
    %233 = tpu.reciprocal %232 {approx = true} : vector<16x1xf32> -> vector<16x1xf32>
    %234 = arith.mulf %232, %233 : vector<16x1xf32>
    %cst_130 = arith.constant 2.000000e+00 : f32
    %235 = vector.broadcast %cst_130 : f32 to vector<16x1xf32>
    %236 = arith.subf %235, %234 : vector<16x1xf32>
    %237 = arith.mulf %233, %236 : vector<16x1xf32>
    %238 = vector.broadcast %237 : vector<16x1xf32> to vector<16x128xf32>
    %239 = arith.mulf %230, %238 : vector<16x128xf32>
    %240 = arith.truncf %239 : vector<16x128xf32> to vector<16x128xbf16>
    %c0_131 = arith.constant 0 : index
    %c768_132 = arith.constant 768 : index
    %241 = vector.load %arg9[%c0_131, %c768_132] : memref<16x896xbf16, #tpu.memory_space<vmem>>, vector<16x128xbf16>
    tpu.vector_store %arg9[%c0_131, %c768_132], %240 {strides = array<i32>} : memref<16x896xbf16, #tpu.memory_space<vmem>>, vector<16x128xbf16>,
    return
  }
  func.func @transform_0(%arg0: i32) -> (i32, i32) {
    %c0_i32 = arith.constant 0 : i32
    %c0_i32_0 = arith.constant 0 : i32
    return %arg0, %c0_i32 : i32, i32
  }
  func.func @transform_1(%arg0: i32) -> (i32, i32) {
    %c0_i32 = arith.constant 0 : i32
    %c0_i32_0 = arith.constant 0 : i32
    return %arg0, %c0_i32 : i32, i32
  }
  func.func @transform_2(%arg0: i32) -> (i32, i32) {
    %c0_i32 = arith.constant 0 : i32
    %c0_i32_0 = arith.constant 0 : i32
    %c0_i32_1 = arith.constant 0 : i32
    return %c0_i32, %c0_i32_0 : i32, i32
  }
  func.func @transform_3(%arg0: i32) -> (i32, i32) {
    %c0_i32 = arith.constant 0 : i32
    %c0_i32_0 = arith.constant 0 : i32
    %c0_i32_1 = arith.constant 0 : i32
    return %c0_i32, %c0_i32_0 : i32, i32
  }
  func.func @transform_4(%arg0: i32) -> (i32, i32) {
    %c0_i32 = arith.constant 0 : i32
    %c0_i32_0 = arith.constant 0 : i32
    %c0_i32_1 = arith.constant 0 : i32
    return %c0_i32, %c0_i32_0 : i32, i32
  }
  func.func @transform_5(%arg0: i32) -> (i32, i32) {
    %c0_i32 = arith.constant 0 : i32
    %c0_i32_0 = arith.constant 0 : i32
    %c0_i32_1 = arith.constant 0 : i32
    return %c0_i32, %c0_i32_0 : i32, i32
  }
  func.func @transform_6(%arg0: i32) -> (i32, i32) {
    %c0_i32 = arith.constant 0 : i32
    %c0_i32_0 = arith.constant 0 : i32
    %c0_i32_1 = arith.constant 0 : i32
    return %c0_i32, %c0_i32_0 : i32, i32
  }
  func.func @transform_7(%arg0: i32) -> (i32, i32) {
    %c0_i32 = arith.constant 0 : i32
    %c0_i32_0 = arith.constant 0 : i32
    %c0_i32_1 = arith.constant 0 : i32
    return %c0_i32, %c0_i32_0 : i32, i32
  }
  func.func @transform_8(%arg0: i32) -> (i32, i32) {
    %c0_i32 = arith.constant 0 : i32
    %c0_i32_0 = arith.constant 0 : i32
    return %arg0, %c0_i32 : i32, i32
  }
}

</mosaic_0001>

<bundles_post_ra>
// kernel: decision_maker_c51.1
= control target key start
LH: loop header
LB: loop body
LE: loop exit
PB: predicated region body
PF: predicated region fallthrough
CT: control target
= control target key end

     0   :  { %13 = vsyncpa [#allocation4], 0  ;;  %s2597_s0 = inlined_call_operand.vmem [shape: bf16[32,128], index: 0, kind: input, shape index: {}]   ;;  %s2598_s1 = inlined_call_operand.vmem [shape: bf16[32,896], index: 1, kind: input, shape index: {}]   ;;  %s2599_s2 = inlined_call_operand.vmem [shape: f32[128,512], index: 2, kind: input, shape index: {}]   ;;  %s2600_s3 = inlined_call_operand.vmem [shape: f32[1,512], index: 3, kind: input, shape index: {}]   ;;  %s2601_s4 = inlined_call_operand.vmem [shape: f32[128,128], index: 4, kind: input, shape index: {}]   ;;  %s2602_s5 = inlined_call_operand.vmem [shape: f32[1,128], index: 5, kind: input, shape index: {}]   ;;  %s2603_s6 = inlined_call_operand.vmem [shape: f32[128,128], index: 6, kind: input, shape index: {}]   ;;  %s2604_s7 = inlined_call_operand.vmem [shape: f32[1,128], index: 7, kind: input, shape index: {}]   ;;  %s2605_s8 = inlined_call_operand.hbm [shape: bf16[32,896], index: 8, kind: output, shape index: {}]  }
   0x1   :  { %15 = vsyncpa [#allocation4 + $0x1], 0  ;;  %s1713_s27 = smov 0   ;;  %s1715_s28 = smov 0  }
   0x2   :  { %s1717_s29 = smov 0   ;;  %s1719_s30 = smov 0  }
   0x3 LB: > { %s1734_s9 = sadd.s32 4294967295, %s1664_s30   ;;  %s1451_s10 = sadd.s32 4294967294, %s1664_s30   ;;  %s1664_s30 = sphi %s1719_s30, %s2612_s30   ;;  %s1660_s29 = sphi %s1717_s29, %s2611_s29   ;;  %s1656_s28 = sphi %s1715_s28, %s2610_s28   ;;  %s1652_s27 = sphi %s1713_s27, %s2609_s27  }
   0x4   : > { %s1738_s11 = sadd.s32 1, %s1664_s30   ;;  %s206_s12 = sadd.s32 1, %s1660_s29 }
   0x5   : > { %s203_s13 = ssub.s32 %s1664_s30, %s1738_s11  ;;  %p216_p0 = scmp.ne.s32.totalorder %s1660_s29, %s1656_s28 }
   0x6   : > { %p204_p1 = scmp.eq.s32.totalorder %s203_s13, 0  ;;  %p217_p2 = scmp.eq.s32.totalorder %s1734_s9, 1 }
   0x7   : > { %p222_p3 = scmp.ne.s32.totalorder %s1656_s28, %s1652_s27  ;;  %p223_p4 = scmp.eq.s32.totalorder %s1451_s10, 1 }
   0x8   : > { %s1749_s14 = scalar_select %p204_p1, %s1660_s29, %s206_s12  }
   0x9   : > { %p1751_p5 = por %p217_p2, %p216_p0  ;;  %p1755_p6 = por %p223_p4, %p222_p3 }
   0xa   : > { %p1454_p7 = scmp.ge.s32.totalorder %s1664_s30, 1  ;;  %p278_p8 = scmp.lt.s32.totalorder %s1664_s30, 3 }
   0xc   : > { %p279_p9 = pnand %p1454_p7, %p278_p8 }
   0xd   : > { %s1455_s20 = sshll.u32 (!%p279_p9), %s1734_s9, 1  ;;  %s315_s17 = sand.u32 (!%p279_p9), 1, %s1656_s28  }
   0xe   : > { %282 = sbr.rel (%p279_p9) target bundleno = 789 (0x315), region = 52  ;;  %p1845_p10 = scmp.lt.s32.totalorder (!%p279_p9), %s1455_s20, 3 }
   0xf   : > { %s1500_s19 = smul.u32 (!%p279_p9), 56, %s315_s17 }
  0x13   : > { %v398_v0 = vld [vmem:[%s2599_s2 + $0x1f0] sm:$0xff]  ;;  %v399_v2 = vld [vmem:[%s2599_s2 + $0x1f8] sm:$0xff]  ;;  %v396_v4 = vld [vmem:[%s2599_s2 + $0x1e0] sm:$0xff]  ;;  %s2614_s20 = smov (!%p1845_p10, %s1455_s20), 3 }
  0x14   : > { %v394_v1 = vld [vmem:[%s2599_s2 + $0x1d0] sm:$0xff]  ;;  %456 = vmatpush.msra.mxu2 %v398_v0  ;;  %479 = vmatpush.msra.mxu3 %v399_v2  ;;  %v395_v3 = vld [vmem:[%s2599_s2 + $0x1d8] sm:$0xff]  ;;  %v397_v6 = vld [vmem:[%s2599_s2 + $0x1e8] sm:$0xff]  ;;  %s1456_s18 = sshll.u32 %s2614_s20, 2  ;;  %s1501_s10 = smul.u32 28, %s2614_s20 }
  0x15   : > { %v390_v5 = vld [vmem:[%s2599_s2 + $0x1b0] sm:$0xff]  ;;  %410 = vmatpush.msra.mxu0 %v396_v4  ;;  %v391_v7 = vld [vmem:[%s2599_s2 + $0x1b8] sm:$0xff]  ;;  %v392_v8 = vld [vmem:[%s2599_s2 + $0x1c0] sm:$0xff]  ;;  %433 = vmatpush.msra.mxu1 %v397_v6  ;;  %s322_s23 = scalar_lea.vmem %s2597_s0, %s1456_s18  ;;  %s2534_s20 = scalar_lea.vmem [#allocation3], %s1500_s19 }
  0x16   : > { %457 = vmatpush.msra.mxu2 %v394_v1  ;;  %480 = vmatpush.msra.mxu3 %v395_v3  ;;  %v393_v9 = vld [vmem:[%s2599_s2 + $0x1c8] sm:$0xff]  ;;  %v386_v10 = vld [vmem:[%s2599_s2 + $0x190] sm:$0xff]  ;;  %v387_v11 = vld [vmem:[%s2599_s2 + $0x198] sm:$0xff]  ;;  %s2121_s18 = scalar_lea.vmem %s2598_s1, %s1501_s10  ;;  %s1374_s25 = sshll.u32 %s2534_s20, 4  ;;  %s1375_s25 = int_to_ptr.vmem [resolvable:$true] %s1374_s25 }
  0x17   : > { %411 = vmatpush.msra.mxu0 %v392_v8  ;;  %v388_v12 = vld [vmem:[%s2599_s2 + $0x1a0] sm:$0xff]  ;;  %v389_v13 = vld [vmem:[%s2599_s2 + $0x1a8] sm:$0xff]  ;;  %434 = vmatpush.msra.mxu1 %v393_v9  ;;  %v382_v15 = vld [vmem:[%s2599_s2 + $0x170] sm:$0xff]  ;;  %s1622_s19 = scalar_lea.hbm %s2605_s8, 112 }
  0x18   : > { %458 = vmatpush.msra.mxu2 %v390_v5  ;;  %481 = vmatpush.msra.mxu3 %v391_v7  ;;  %v384_v14 = vld [vmem:[%s2599_s2 + $0x180] sm:$0xff]  ;;  %v383_v16 = vld [vmem:[%s2599_s2 + $0x178] sm:$0xff]  ;;  %v385_v17 = vld [vmem:[%s2599_s2 + $0x188] sm:$0xff] }
  0x19   : > { %412 = vmatpush.msra.mxu0 %v388_v12  ;;  %v380_v18 = vld [vmem:[%s2599_s2 + $0x160] sm:$0xff]  ;;  %435 = vmatpush.msra.mxu1 %v389_v13  ;;  %v378_v19 = vld [vmem:[%s2599_s2 + $0x150] sm:$0xff]  ;;  %v379_v20 = vld [vmem:[%s2599_s2 + $0x158] sm:$0xff] }
  0x1a   : > { %459 = vmatpush.msra.mxu2 %v386_v10  ;;  %482 = vmatpush.msra.mxu3 %v387_v11  ;;  %v381_v21 = vld [vmem:[%s2599_s2 + $0x168] sm:$0xff]  ;;  %v376_v22 = vld [vmem:[%s2599_s2 + $0x140] sm:$0xff]  ;;  %v374_v23 = vld [vmem:[%s2599_s2 + $0x130] sm:$0xff] }
  0x1b   : > { %413 = vmatpush.msra.mxu0 %v384_v14  ;;  %436 = vmatpush.msra.mxu1 %v385_v17  ;;  %v375_v24 = vld [vmem:[%s2599_s2 + $0x138] sm:$0xff]  ;;  %v377_v25 = vld [vmem:[%s2599_s2 + $0x148] sm:$0xff]  ;;  %v372_v26 = vld [vmem:[%s2599_s2 + $0x120] sm:$0xff] }
  0x1c   : > { %460 = vmatpush.msra.mxu2 %v382_v15  ;;  %483 = vmatpush.msra.mxu3 %v383_v16  ;;  %v370_v27 = vld [vmem:[%s2599_s2 + $0x110] sm:$0xff]  ;;  %v371_v28 = vld [vmem:[%s2599_s2 + $0x118] sm:$0xff]  ;;  %v373_v29 = vld [vmem:[%s2599_s2 + $0x128] sm:$0xff] }
  0x1d   : > { %414 = vmatpush.msra.mxu0 %v380_v18  ;;  %437 = vmatpush.msra.mxu1 %v381_v21  ;;  %v368_v30 = vld [vmem:[%s2599_s2 + $0x100] sm:$0xff]  ;;  %v366_v31 = vld [vmem:[%s2599_s2 + $0xf0] sm:$0xff]  ;;  %v367_v32 = vld [vmem:[%s2599_s2 + $0xf8] sm:$0xff] }
  0x1e   : > { %461 = vmatpush.msra.mxu2 %v378_v19  ;;  %484 = vmatpush.msra.mxu3 %v379_v20  ;;  %v369_v33 = vld [vmem:[%s2599_s2 + $0x108] sm:$0xff]  ;;  %v364_v34 = vld [vmem:[%s2599_s2 + $0xe0] sm:$0xff]  ;;  %v362_v35 = vld [vmem:[%s2599_s2 + $0xd0] sm:$0xff] }
  0x1f   : > { %415 = vmatpush.msra.mxu0 %v376_v22  ;;  %438 = vmatpush.msra.mxu1 %v377_v25  ;;  %v363_v36 = vld [vmem:[%s2599_s2 + $0xd8] sm:$0xff]  ;;  %v365_v37 = vld [vmem:[%s2599_s2 + $0xe8] sm:$0xff]  ;;  %v360_v38 = vld [vmem:[%s2599_s2 + $0xc0] sm:$0xff] }
  0x20   : > { %462 = vmatpush.msra.mxu2 %v374_v23  ;;  %485 = vmatpush.msra.mxu3 %v375_v24  ;;  %v358_v39 = vld [vmem:[%s2599_s2 + $0xb0] sm:$0xff]  ;;  %v359_v40 = vld [vmem:[%s2599_s2 + $0xb8] sm:$0xff]  ;;  %v361_v41 = vld [vmem:[%s2599_s2 + $0xc8] sm:$0xff] }
  0x21   : > { %416 = vmatpush.msra.mxu0 %v372_v26  ;;  %439 = vmatpush.msra.mxu1 %v373_v29  ;;  %v356_v42 = vld [vmem:[%s2599_s2 + $0xa0] sm:$0xff]  ;;  %v354_v43 = vld [vmem:[%s2599_s2 + $0x90] sm:$0xff]  ;;  %v355_v44 = vld [vmem:[%s2599_s2 + $0x98] sm:$0xff] }
  0x22   : > { %463 = vmatpush.msra.mxu2 %v370_v27  ;;  %486 = vmatpush.msra.mxu3 %v371_v28  ;;  %v357_v45 = vld [vmem:[%s2599_s2 + $0xa8] sm:$0xff]  ;;  %v352_v46 = vld [vmem:[%s2599_s2 + $0x80] sm:$0xff]  ;;  %v350_v47 = vld [vmem:[%s2599_s2 + $0x70] sm:$0xff] }
  0x23   : > { %417 = vmatpush.msra.mxu0 %v368_v30  ;;  %440 = vmatpush.msra.mxu1 %v369_v33  ;;  %v351_v48 = vld [vmem:[%s2599_s2 + $0x78] sm:$0xff]  ;;  %v353_v49 = vld [vmem:[%s2599_s2 + $0x88] sm:$0xff]  ;;  %v348_v50 = vld [vmem:[%s2599_s2 + $0x60] sm:$0xff] }
  0x24   : > { %464 = vmatpush.msra.mxu2 %v366_v31  ;;  %487 = vmatpush.msra.mxu3 %v367_v32  ;;  %v346_v51 = vld [vmem:[%s2599_s2 + $0x50] sm:$0xff]  ;;  %v347_v53 = vld [vmem:[%s2599_s2 + $0x58] sm:$0xff]  ;;  %v349_v54 = vld [vmem:[%s2599_s2 + $0x68] sm:$0xff] }
  0x25   : > { %418 = vmatpush.msra.mxu0 %v364_v34  ;;  %441 = vmatpush.msra.mxu1 %v365_v37  ;;  %v342_v52 = vld [vmem:[%s2599_s2 + $0x30] sm:$0xff]  ;;  %v1465_v55 = vld [vmem:[%s322_s23] sm:$0xff]   ;;  %v343_v57 = vld [vmem:[%s2599_s2 + $0x38] sm:$0xff]  ;;  %s1502_s23 = smul.u32 56, %s1734_s9  ;;  %s1361_s9 = scalar_lea.sflag [#allocation4], %s315_s17 }
  0x26   : > { %465 = vmatpush.msra.mxu2 %v362_v35  ;;  %488 = vmatpush.msra.mxu3 %v363_v36  ;;  %v344_v56 = vld [vmem:[%s2599_s2 + $0x40] sm:$0xff]  ;;  %v345_v58 = vld [vmem:[%s2599_s2 + $0x48] sm:$0xff]  ;;  %v338_v60 = vld [vmem:[%s2599_s2 + $0x10] sm:$0xff]  ;;  %v1466_v61 = vunpack.c.l.bf16 %v1465_v55  ;;  %v1467_v5 = vunpack.c.h.bf16 %v1465_v55 }
  0x27   : > { %419 = vmatpush.msra.mxu0 %v360_v38  ;;  %442 = vmatpush.msra.mxu1 %v361_v41  ;;  %v340_v59 = vld [vmem:[%s2599_s2 + $0x20] sm:$0xff]  ;;  %v339_v62 = vld [vmem:[%s2599_s2 + $0x18] sm:$0xff]  ;;  %v341_v63 = vld [vmem:[%s2599_s2 + $0x28] sm:$0xff]  ;;  %s1373_s24 = scalar_lea.hbm %s2605_s8, %s1502_s23 }
  0x28   : > { %466 = vmatpush.msra.mxu2 %v358_v39  ;;  %489 = vmatpush.msra.mxu3 %v359_v40  ;;  %v336_v0 = vld [vmem:[%s2599_s2] sm:$0xff]  ;;  %v1970_v1 = vld [vmem:[%s2601_s4 + $0x78] sm:$0xff]  ;;  %v337_v2 = vld [vmem:[%s2599_s2 + $0x8] sm:$0xff]  ;;  %s1376_s26 = sshll.u32 %s1373_s24, 4  ;;  %s1377_s26 = int_to_ptr.hbm [resolvable:$true] %s1376_s26 }
  0x29   : > { %420 = vmatpush.msra.mxu0 %v356_v42  ;;  %443 = vmatpush.msra.mxu1 %v357_v45  ;;  %v1978_v3 = vld [vmem:[%s2601_s4 + $0x70] sm:$0xff]  ;;  %v1985_v4 = vld [vmem:[%s2601_s4 + $0x68] sm:$0xff]  ;;  %v1993_v6 = vld [vmem:[%s2601_s4 + $0x60] sm:$0xff]  ;;  %s1616_s10 = sshra.s32 %s1377_s26, 4  ;;  %s1617_s10 = int_to_ptr.hbm [resolvable:$true] %s1616_s10 }
  0x2a   : > { %467 = vmatpush.msra.mxu2 %v354_v43  ;;  %490 = vmatpush.msra.mxu3 %v355_v44  ;;  %v1999_v7 = vld [vmem:[%s2601_s4 + $0x58] sm:$0xff]  ;;  %v2006_v8 = vld [vmem:[%s2601_s4 + $0x50] sm:$0xff]  ;;  %v2013_v9 = vld [vmem:[%s2601_s4 + $0x48] sm:$0xff]  ;;  %p1623_p0 = scmp.lt.s32.totalorder %s1617_s10, %s2605_s8 }
  0x2b   : > { %421 = vmatpush.msra.mxu0 %v352_v46  ;;  %444 = vmatpush.msra.mxu1 %v353_v49  ;;  %v2020_v10 = vld [vmem:[%s2601_s4 + $0x40] sm:$0xff]  ;;  %v2027_v11 = vld [vmem:[%s2601_s4 + $0x38] sm:$0xff]  ;;  %v2034_v12 = vld [vmem:[%s2601_s4 + $0x30] sm:$0xff] }
  0x2c   : > { %468 = vmatpush.msra.mxu2 %v350_v47  ;;  %491 = vmatpush.msra.mxu3 %v351_v48  ;;  %v2041_v13 = vld [vmem:[%s2601_s4 + $0x28] sm:$0xff]  ;;  %v2048_v14 = vld [vmem:[%s2601_s4 + $0x20] sm:$0xff]  ;;  %v2055_v15 = vld [vmem:[%s2601_s4 + $0x18] sm:$0xff] }
  0x2d   : > { %422 = vmatpush.msra.mxu0 %v348_v50  ;;  %445 = vmatpush.msra.mxu1 %v349_v54  ;;  %v2062_v16 = vld [vmem:[%s2601_s4 + $0x10] sm:$0xff]  ;;  %v2069_v17 = vld [vmem:[%s2601_s4 + $0x8] sm:$0xff]  ;;  %v2076_v18 = vld [vmem:[%s2601_s4] sm:$0xff] }
  0x2e   : > { %469 = vmatpush.msra.mxu2 %v346_v51  ;;  %492 = vmatpush.msra.mxu3 %v347_v53  ;;  %v400_v19 = vld [vmem:[%s2600_s3] sm:$0xf]  ;;  %v1240_v31 = vld [vmem:[%s2121_s18 + $0x18] sm:$0xf] }
  0x2f   : > { %423 = vmatpush.msra.mxu0 %v344_v56  ;;  %446 = vmatpush.msra.mxu1 %v345_v58  ;;  %v402_v20 = vperm.slane %v400_v19, 0  ;;  %v403_v21 = vperm.slane %v400_v19, 1  ;;  %v404_v23 = vperm.slane %v400_v19, 2  ;;  %v405_v24 = vperm.slane %v400_v19, 3  ;;  %v514_v26 = vld [vmem:[%s2121_s18] sm:$0xff]  }
  0x30   : > { %470 = vmatpush.msra.mxu2 %v342_v52  ;;  %493 = vmatpush.msra.mxu3 %v343_v57  ;;  %v516_v34 = vunpack.c.l.bf16 %v514_v26  ;;  %v642_v35 = vunpack.c.h.bf16 %v514_v26  ;;  %v1242_v38 = vunpack.c.l.bf16 %v1240_v31  ;;  %v515_v43 = vld [vmem:[%s2121_s18 + $0x1c] sm:$0xff]  }
  0x31   : > { %424 = vmatpush.msra.mxu0 %v340_v59  ;;  %447 = vmatpush.msra.mxu1 %v341_v63  ;;  %v517_v52 = vunpack.c.l.bf16 %v515_v43  ;;  %v643_v55 = vunpack.c.h.bf16 %v515_v43  ;;  %v760_v59 = vld [vmem:[%s2121_s18 + $0x8] sm:$0xff]  }
  0x32   : > { %471 = vmatpush.msra.mxu2 %v338_v60  ;;  %494 = vmatpush.msra.mxu3 %v339_v62 }
  0x33   : > { %472 = vmatmul.f32.vlgmr.msra.gmra.mxu2 %v1466_v61  ;;  %495 = vmatmul.f32.vlgmr.msra.gmra.mxu3 %v1466_v61 }
  0x34   : > { %425 = vmatpush.msra.mxu0 %v336_v0  ;;  %668 = vmatpush.msrb.mxu2 %v1970_v1 }
  0x35   : > { %426 = vmatmul.f32.vlgmr.msra.gmra.mxu0 %v1466_v61  ;;  %448 = vmatpush.msra.mxu1 %v337_v2  ;;  %v762_v2 = vunpack.c.l.bf16 %v760_v59 }
  0x36   : > { %545 = vmatpush.msrb.mxu0 %v1970_v1  ;;  %449 = vmatmul.f32.vlgmr.msra.gmra.mxu1 %v1466_v61 }
  0x37   : > { %669 = vmatpush.msrb.mxu2 %v1978_v3 }
  0x38   : > { %546 = vmatpush.msrb.mxu0 %v1978_v3 }
  0x39   : > { %670 = vmatpush.msrb.mxu2 %v1985_v4 }
  0x3a   : > { %547 = vmatpush.msrb.mxu0 %v1985_v4 }
  0x3b   : > { %475 = vmatmul.f32.gmra.mxu2 %v1467_v5  ;;  %498 = vmatmul.f32.gmra.mxu3 %v1467_v5 }
  0x3c   : > { %548 = vmatpush.msrb.mxu0 %v1993_v6  ;;  %671 = vmatpush.msrb.mxu2 %v1993_v6 }
  0x3d   : > { %429 = vmatmul.f32.gmra.mxu0 %v1467_v5 }
  0x3e   : > { %549 = vmatpush.msrb.mxu0 %v1999_v7  ;;  %672 = vmatpush.msrb.mxu2 %v1999_v7 }
  0x3f   : > { %452 = vmatmul.f32.gmra.mxu1 %v1467_v5  ;;  %v882_v5 = vunpack.c.h.bf16 %v760_v59 }
  0x40   : > { %550 = vmatpush.msrb.mxu0 %v2006_v8  ;;  %673 = vmatpush.msrb.mxu2 %v2006_v8 }
  0x42   : > { %551 = vmatpush.msrb.mxu0 %v2013_v9  ;;  %674 = vmatpush.msrb.mxu2 %v2013_v9 }
  0x44   : > { %552 = vmatpush.msrb.mxu0 %v2020_v10  ;;  %675 = vmatpush.msrb.mxu2 %v2020_v10 }
  0x46   : > { %553 = vmatpush.msrb.mxu0 %v2027_v11  ;;  %676 = vmatpush.msrb.mxu2 %v2027_v11 }
  0x48   : > { %554 = vmatpush.msrb.mxu0 %v2034_v12  ;;  %677 = vmatpush.msrb.mxu2 %v2034_v12 }
  0x4a   : > { %555 = vmatpush.msrb.mxu0 %v2041_v13  ;;  %678 = vmatpush.msrb.mxu2 %v2041_v13 }
  0x4c   : > { %556 = vmatpush.msrb.mxu0 %v2048_v14  ;;  %679 = vmatpush.msrb.mxu2 %v2048_v14 }
  0x4e   : > { %557 = vmatpush.msrb.mxu0 %v2055_v15  ;;  %680 = vmatpush.msrb.mxu2 %v2055_v15 }
  0x50   : > { %558 = vmatpush.msrb.mxu0 %v2062_v16  ;;  %681 = vmatpush.msrb.mxu2 %v2062_v16 }
  0x52   : > { %559 = vmatpush.msrb.mxu0 %v2069_v17  ;;  %682 = vmatpush.msrb.mxu2 %v2069_v17 }
  0x54   : > { %560 = vmatpush.msrb.mxu0 %v2076_v18  ;;  %683 = vmatpush.msrb.mxu2 %v2076_v18 }
  0x56   : > { %788 = vmatpush.msra.mxu0 %v1970_v1  ;;  %908 = vmatpush.msra.mxu2 %v1970_v1 }
  0x58   : > { %789 = vmatpush.msra.mxu0 %v1978_v3  ;;  %909 = vmatpush.msra.mxu2 %v1978_v3 }
  0x5a   : > { %790 = vmatpush.msra.mxu0 %v1985_v4  ;;  %910 = vmatpush.msra.mxu2 %v1985_v4 }
  0x5c   : > { %791 = vmatpush.msra.mxu0 %v1993_v6  ;;  %911 = vmatpush.msra.mxu2 %v1993_v6 }
  0x5e   : > { %792 = vmatpush.msra.mxu0 %v1999_v7  ;;  %912 = vmatpush.msra.mxu2 %v1999_v7 }
  0x60   : > { %793 = vmatpush.msra.mxu0 %v2006_v8  ;;  %913 = vmatpush.msra.mxu2 %v2006_v8 }
  0x62   : > { %794 = vmatpush.msra.mxu0 %v2013_v9  ;;  %914 = vmatpush.msra.mxu2 %v2013_v9 }
  0x64   : > { %795 = vmatpush.msra.mxu0 %v2020_v10  ;;  %915 = vmatpush.msra.mxu2 %v2020_v10 }
  0x66   : > { %796 = vmatpush.msra.mxu0 %v2027_v11  ;;  %916 = vmatpush.msra.mxu2 %v2027_v11 }
  0x68   : > { %797 = vmatpush.msra.mxu0 %v2034_v12  ;;  %917 = vmatpush.msra.mxu2 %v2034_v12 }
  0x6a   : > { %798 = vmatpush.msra.mxu0 %v2041_v13  ;;  %918 = vmatpush.msra.mxu2 %v2041_v13 }
  0x6c   : > { %799 = vmatpush.msra.mxu0 %v2048_v14  ;;  %919 = vmatpush.msra.mxu2 %v2048_v14 }
  0x6e   : > { %800 = vmatpush.msra.mxu0 %v2055_v15  ;;  %920 = vmatpush.msra.mxu2 %v2055_v15 }
  0x70   : > { %801 = vmatpush.msra.mxu0 %v2062_v16  ;;  %921 = vmatpush.msra.mxu2 %v2062_v16 }
  0x72   : > { %802 = vmatpush.msra.mxu0 %v2069_v17  ;;  %922 = vmatpush.msra.mxu2 %v2069_v17 }
  0x74   : > { %803 = vmatpush.msra.mxu0 %v2076_v18  ;;  %923 = vmatpush.msra.mxu2 %v2076_v18 }
  0xb2   : > { %v427_v22 = vpop.f32.mrf.mxu0 }
  0xb3   : > { %v450_v25 = vpop.f32.mrf.mxu1  ;;  %v428_v27 = vadd.f32 %v427_v22, %v402_v20 }
  0xb4   : > { %v451_v28 = vadd.f32 %v450_v25, %v403_v21 }
  0xb6   : > { %v473_v29 = vpop.f32.mrf.mxu2  ;;  %v496_v30 = vpop.f32.mrf.mxu3 }
  0xb7   : > { %v474_v32 = vadd.f32 %v473_v29, %v404_v23  ;;  %v497_v33 = vadd.f32 %v496_v30, %v405_v24 }
  0xb9   : > { %v2125_v36 = vmul.f32 %v474_v32, %v428_v27  ;;  %v506_v37 = vmul.f32 %v474_v32, %v451_v28  ;;  %v1000_v28 = vld [vmem:[%s2121_s18 + $0x10] sm:$0xff]  }
  0xba   : > { %v430_v39 = vpop.f32.mrf.mxu0  ;;  %v1002_v31 = vunpack.c.l.bf16 %v1000_v28  ;;  %v1122_v32 = vunpack.c.h.bf16 %v1000_v28 }
  0xbb   : > { %v2127_v40 = vadd.f32 %v506_v37, %v497_v33  ;;  %v520_v41 = vmul.f32 %v516_v34, %v2125_v36  ;;  %v646_v42 = vmul.f32 %v642_v35, %v2125_v36  ;;  %v431_v44 = vadd.f32 %v430_v39, %v402_v20  ;;  %v1001_v35 = vld [vmem:[%s2121_s18 + $0x2c] sm:$0xff]  }
  0xbc   : > { %v453_v45 = vpop.f32.mrf.mxu1  ;;  %v1246_v49 = vmul.f32 %v1242_v38, %v2125_v36  ;;  %v766_v19 = vmul.f32 %v762_v2, %v2125_v36  ;;  %v886_v20 = vmul.f32 %v882_v5, %v2125_v36  ;;  %v1006_v33 = vmul.f32 %v1002_v31, %v2125_v36 }
  0xbd   : > { %v454_v46 = vadd.f32 %v453_v45, %v403_v21  ;;  %v524_v47 = vadd.f32 %v520_v41, %v2127_v40  ;;  %v650_v48 = vadd.f32 %v646_v42, %v2127_v40  ;;  %v761_v21 = vld [vmem:[%s2121_s18 + $0x24] sm:$0xff]   ;;  %v1126_v34 = vmul.f32 %v1122_v32, %v2125_v36  ;;  %v2199_v36 = vld [vmem:[%s2603_s6 + $0x78] sm:$0xff] }
  0xbe   : > { %v476_v50 = vpop.f32.mrf.mxu2  ;;  %v499_v51 = vpop.f32.mrf.mxu3  ;;  %v2136_v56 = vadd.f32 %v1246_v49, %v2127_v40  ;;  %v770_v22 = vadd.f32 %v766_v19, %v2127_v40  ;;  %v883_v25 = vunpack.c.h.bf16 %v761_v21  ;;  %v1010_v37 = vadd.f32 %v1006_v33, %v2127_v40  ;;  %589 = vmatpush.msrb.mxu1 %v2199_v36  ;;  %709 = vmatpush.msrb.mxu3 %v2199_v36  ;;  %v2276_v45 = vld [vmem:[%s2603_s6 + $0x38] sm:$0xff] }
  0xbf   : > { %v477_v53 = vadd.f32 %v476_v50, %v404_v23  ;;  %561 = vmatmul.f32.vlgmr.msrb.gmra.mxu0 %v524_v47  ;;  %684 = vmatmul.f32.vlgmr.msrb.gmra.mxu2 %v650_v48  ;;  %v500_v54 = vadd.f32 %v499_v51, %v405_v24  ;;  %v890_v23 = vadd.f32 %v886_v20, %v2127_v40  ;;  %v763_v24 = vunpack.c.l.bf16 %v761_v21  ;;  %v2313_v47 = vld [vmem:[%s2603_s6 + $0x18] sm:$0xff]  ;;  %v2340_v48 = vld [vmem:[%s2603_s6] sm:$0xff] }
  0xc0   : > { %1028 = vmatpush.msrb.mxu0 %v1970_v1  ;;  %1148 = vmatpush.msrb.mxu2 %v1970_v1  ;;  %v1130_v38 = vadd.f32 %v1126_v34, %v2127_v40  ;;  %v1003_v39 = vunpack.c.l.bf16 %v1001_v35  ;;  %v1123_v41 = vunpack.c.h.bf16 %v1001_v35  ;;  %v2206_v40 = vld [vmem:[%s2603_s6 + $0x70] sm:$0xff] }
  0xc1   : > { %v2140_v57 = vmul.f32 %v477_v53, %v431_v44  ;;  %v507_v58 = vmul.f32 %v477_v53, %v454_v46  ;;  %590 = vmatpush.msrb.mxu1 %v2206_v40  ;;  %710 = vmatpush.msrb.mxu3 %v2206_v40  ;;  %v2294_v46 = vld [vmem:[%s2603_s6 + $0x28] sm:$0xff] }
  0xc2   : > { %1029 = vmatpush.msrb.mxu0 %v1978_v3  ;;  %1149 = vmatpush.msrb.mxu2 %v1978_v3 }
  0xc3   : > { %v2145_v60 = vadd.f32 %v507_v58, %v500_v54  ;;  %v521_v61 = vmul.f32 %v517_v52, %v2140_v57  ;;  %v647_v62 = vmul.f32 %v643_v55, %v2140_v57  ;;  %v767_v26 = vmul.f32 %v763_v24, %v2140_v57 }
  0xc4   : > { %1030 = vmatpush.msrb.mxu0 %v1985_v4  ;;  %1150 = vmatpush.msrb.mxu2 %v1985_v4  ;;  %v887_v27 = vmul.f32 %v883_v25, %v2140_v57  ;;  %v1007_v42 = vmul.f32 %v1003_v39, %v2140_v57 }
  0xc5   : > { %v525_v63 = vadd.f32 %v521_v61, %v2145_v60  ;;  %v651_v0 = vadd.f32 %v647_v62, %v2145_v60  ;;  %v771_v29 = vadd.f32 %v767_v26, %v2145_v60 }
  0xc6   : > { %1031 = vmatpush.msrb.mxu0 %v1993_v6  ;;  %1151 = vmatpush.msrb.mxu2 %v1993_v6  ;;  %v891_v30 = vadd.f32 %v887_v27, %v2145_v60  ;;  %v1011_v43 = vadd.f32 %v1007_v42, %v2145_v60 }
  0xc7   : > { %564 = vmatmul.f32.gmra.mxu0 %v525_v63  ;;  %687 = vmatmul.f32.gmra.mxu2 %v651_v0 }
  0xc8   : > { %1032 = vmatpush.msrb.mxu0 %v1999_v7  ;;  %1152 = vmatpush.msrb.mxu2 %v1999_v7 }
  0xca   : > { %1033 = vmatpush.msrb.mxu0 %v2006_v8  ;;  %1153 = vmatpush.msrb.mxu2 %v2006_v8 }
  0xcc   : > { %1034 = vmatpush.msrb.mxu0 %v2013_v9  ;;  %1154 = vmatpush.msrb.mxu2 %v2013_v9 }
  0xce   : > { %1035 = vmatpush.msrb.mxu0 %v2020_v10  ;;  %1155 = vmatpush.msrb.mxu2 %v2020_v10 }
  0xcf   : > { %804 = vmatmul.f32.vlgmr.msra.gmra.mxu0 %v770_v22  ;;  %924 = vmatmul.f32.vlgmr.msra.gmra.mxu2 %v890_v23 }
  0xd0   : > { %1036 = vmatpush.msrb.mxu0 %v2027_v11  ;;  %1156 = vmatpush.msrb.mxu2 %v2027_v11 }
  0xd2   : > { %1037 = vmatpush.msrb.mxu0 %v2034_v12  ;;  %1157 = vmatpush.msrb.mxu2 %v2034_v12 }
  0xd4   : > { %1038 = vmatpush.msrb.mxu0 %v2041_v13  ;;  %1158 = vmatpush.msrb.mxu2 %v2041_v13 }
  0xd6   : > { %1039 = vmatpush.msrb.mxu0 %v2048_v14  ;;  %1159 = vmatpush.msrb.mxu2 %v2048_v14 }
  0xd7   : > { %807 = vmatmul.f32.gmra.mxu0 %v771_v29  ;;  %927 = vmatmul.f32.gmra.mxu2 %v891_v30 }
  0xd8   : > { %1040 = vmatpush.msrb.mxu0 %v2055_v15  ;;  %1160 = vmatpush.msrb.mxu2 %v2055_v15 }
  0xda   : > { %1041 = vmatpush.msrb.mxu0 %v2062_v16  ;;  %1161 = vmatpush.msrb.mxu2 %v2062_v16 }
  0xdc   : > { %1042 = vmatpush.msrb.mxu0 %v2069_v17  ;;  %1162 = vmatpush.msrb.mxu2 %v2069_v17 }
  0xde   : > { %1043 = vmatpush.msrb.mxu0 %v2076_v18  ;;  %1163 = vmatpush.msrb.mxu2 %v2076_v18 }
  0xdf   : > { %1044 = vmatmul.f32.vlgmr.msrb.gmra.mxu0 %v1010_v37  ;;  %1164 = vmatmul.f32.vlgmr.msrb.gmra.mxu2 %v1130_v38 }
  0xe0   : > { %1268 = vmatpush.msra.mxu0 %v1970_v1  ;;  %1468 = vmatpush.msra.mxu2 %v1970_v1  ;;  %v1127_v1 = vmul.f32 %v1123_v41, %v2140_v57 }
  0xe2   : > { %1269 = vmatpush.msra.mxu0 %v1978_v3  ;;  %1469 = vmatpush.msra.mxu2 %v1978_v3  ;;  %v2217_v3 = vld [vmem:[%s2603_s6 + $0x68] sm:$0xff]  ;;  %v1131_v44 = vadd.f32 %v1127_v1, %v2145_v60  ;;  %v1545_v1 = vld [vmem:[%s2604_s7] ss:$0 sm:$0xff] }
  0xe3   : > { %591 = vmatpush.msrb.mxu1 %v2217_v3  ;;  %711 = vmatpush.msrb.mxu3 %v2217_v3 }
  0xe4   : > { %1270 = vmatpush.msra.mxu0 %v1985_v4  ;;  %1470 = vmatpush.msra.mxu2 %v1985_v4  ;;  %v2232_v4 = vld [vmem:[%s2603_s6 + $0x60] sm:$0xff] }
  0xe5   : > { %592 = vmatpush.msrb.mxu1 %v2232_v4  ;;  %712 = vmatpush.msrb.mxu3 %v2232_v4 }
  0xe6   : > { %1271 = vmatpush.msra.mxu0 %v1993_v6  ;;  %1471 = vmatpush.msra.mxu2 %v1993_v6  ;;  %v2239_v6 = vld [vmem:[%s2603_s6 + $0x58] sm:$0xff] }
  0xe7   : > { %1047 = vmatmul.f32.gmra.mxu0 %v1011_v43  ;;  %1167 = vmatmul.f32.gmra.mxu2 %v1131_v44 }
  0xe8   : > { %1272 = vmatpush.msra.mxu0 %v1999_v7  ;;  %1472 = vmatpush.msra.mxu2 %v1999_v7  ;;  %v2248_v7 = vld [vmem:[%s2603_s6 + $0x50] sm:$0xff] }
  0xe9   : > { %593 = vmatpush.msrb.mxu1 %v2239_v6  ;;  %713 = vmatpush.msrb.mxu3 %v2239_v6 }
  0xea   : > { %1273 = vmatpush.msra.mxu0 %v2006_v8  ;;  %1473 = vmatpush.msra.mxu2 %v2006_v8  ;;  %v2257_v8 = vld [vmem:[%s2603_s6 + $0x48] sm:$0xff] }
  0xeb   : > { %594 = vmatpush.msrb.mxu1 %v2248_v7  ;;  %714 = vmatpush.msrb.mxu3 %v2248_v7 }
  0xec   : > { %1274 = vmatpush.msra.mxu0 %v2013_v9  ;;  %1474 = vmatpush.msra.mxu2 %v2013_v9  ;;  %v2266_v9 = vld [vmem:[%s2603_s6 + $0x40] sm:$0xff] }
  0xed   : > { %595 = vmatpush.msrb.mxu1 %v2257_v8  ;;  %715 = vmatpush.msrb.mxu3 %v2257_v8 }
  0xee   : > { %1275 = vmatpush.msra.mxu0 %v2020_v10  ;;  %1475 = vmatpush.msra.mxu2 %v2020_v10  ;;  %v1241_v10 = vld [vmem:[%s2121_s18 + $0x34] sm:$0xf]  ;;  %s1618_s18 = scalar_lea.hbm %s1617_s10, 56 }
  0xef   : > { %596 = vmatpush.msrb.mxu1 %v2266_v9  ;;  %716 = vmatpush.msrb.mxu3 %v2266_v9  ;;  %p1619_p11 = scmp.ne.s32.totalorder %s1617_s10, %s1618_s18  ;;  %p1624_p1 = scmp.lt.s32.totalorder %s1622_s19, %s1618_s18 }
  0xf0   : > { %1276 = vmatpush.msra.mxu0 %v2027_v11  ;;  %1476 = vmatpush.msra.mxu2 %v2027_v11  ;;  %v2285_v11 = vld [vmem:[%s2603_s6 + $0x30] sm:$0xff] }
  0xf1   : > { %597 = vmatpush.msrb.mxu1 %v2276_v45  ;;  %717 = vmatpush.msrb.mxu3 %v2276_v45  ;;  %p1620_p12 = pnand %p1619_p11, %p1751_p5  ;;  %p1625_p2 = por %p1624_p1, %p1623_p0 }
  0xf2   : > { %1277 = vmatpush.msra.mxu0 %v2034_v12  ;;  %1477 = vmatpush.msra.mxu2 %v2034_v12  ;;  %v1243_v12 = vunpack.c.l.bf16 %v1241_v10 }
  0xf3   : > { %598 = vmatpush.msrb.mxu1 %v2285_v11  ;;  %718 = vmatpush.msrb.mxu3 %v2285_v11  ;;  %p1621_p13 = pneg %p1620_p12 }
  0xf4   : > { %1278 = vmatpush.msra.mxu0 %v2041_v13  ;;  %1478 = vmatpush.msra.mxu2 %v2041_v13  ;;  %v2303_v13 = vld [vmem:[%s2603_s6 + $0x20] sm:$0xff] }
  0xf5   : > { %599 = vmatpush.msrb.mxu1 %v2294_v46  ;;  %719 = vmatpush.msrb.mxu3 %v2294_v46  ;;  %p1626_p3 = pnand %p1625_p2, %p1621_p13 }
  0xf6   : > { %1279 = vmatpush.msra.mxu0 %v2048_v14  ;;  %1479 = vmatpush.msra.mxu2 %v2048_v14  ;;  %v1247_v14 = vmul.f32 %v1243_v12, %v2140_v57 }
  0xf7   : > { %600 = vmatpush.msrb.mxu1 %v2303_v13  ;;  %720 = vmatpush.msrb.mxu3 %v2303_v13 }
  0xf8   : > { %1280 = vmatpush.msra.mxu0 %v2055_v15  ;;  %1480 = vmatpush.msra.mxu2 %v2055_v15  ;;  %v1251_v15 = vadd.f32 %v1247_v14, %v2145_v60 }
  0xf9   : > { %601 = vmatpush.msrb.mxu1 %v2313_v47  ;;  %721 = vmatpush.msrb.mxu3 %v2313_v47 }
  0xfa   : > { %1281 = vmatpush.msra.mxu0 %v2062_v16  ;;  %1481 = vmatpush.msra.mxu2 %v2062_v16  ;;  %v2324_v16 = vld [vmem:[%s2603_s6 + $0x10] sm:$0xff] }
  0xfb   : > { %602 = vmatpush.msrb.mxu1 %v2324_v16  ;;  %722 = vmatpush.msrb.mxu3 %v2324_v16 }
  0xfc   : > { %1282 = vmatpush.msra.mxu0 %v2069_v17  ;;  %1482 = vmatpush.msra.mxu2 %v2069_v17  ;;  %v2333_v17 = vld [vmem:[%s2603_s6 + $0x8] sm:$0xff] }
  0xfd   : > { %603 = vmatpush.msrb.mxu1 %v2333_v17  ;;  %723 = vmatpush.msrb.mxu3 %v2333_v17 }
  0xfe   : > { %1283 = vmatpush.msra.mxu0 %v2076_v18  ;;  %1483 = vmatpush.msra.mxu2 %v2076_v18  ;;  %v2381_v18 = vld [vmem:[%s2602_s5] ss:$0 sm:$0xff] }
  0xff   : > { %1284 = vmatmul.f32.vlgmr.msra.gmra.mxu0 %v2136_v56  ;;  %1287 = vmatmul.f32.vlgmr.msra.gmra.mxu2 %v1251_v15 }
 0x100   : > { %604 = vmatpush.msrb.mxu1 %v2340_v48  ;;  %724 = vmatpush.msrb.mxu3 %v2340_v48 }
 0x102   : > { %829 = vmatpush.msra.mxu1 %v2199_v36  ;;  %949 = vmatpush.msra.mxu3 %v2199_v36 }
 0x104   : > { %830 = vmatpush.msra.mxu1 %v2206_v40  ;;  %950 = vmatpush.msra.mxu3 %v2206_v40 }
 0x106   : > { %831 = vmatpush.msra.mxu1 %v2217_v3  ;;  %951 = vmatpush.msra.mxu3 %v2217_v3 }
 0x108   : > { %832 = vmatpush.msra.mxu1 %v2232_v4  ;;  %952 = vmatpush.msra.mxu3 %v2232_v4 }
 0x10a   : > { %833 = vmatpush.msra.mxu1 %v2239_v6  ;;  %953 = vmatpush.msra.mxu3 %v2239_v6 }
 0x10c   : > { %834 = vmatpush.msra.mxu1 %v2248_v7  ;;  %954 = vmatpush.msra.mxu3 %v2248_v7 }
 0x10e   : > { %835 = vmatpush.msra.mxu1 %v2257_v8  ;;  %955 = vmatpush.msra.mxu3 %v2257_v8 }
 0x110   : > { %836 = vmatpush.msra.mxu1 %v2266_v9  ;;  %956 = vmatpush.msra.mxu3 %v2266_v9 }
 0x112   : > { %837 = vmatpush.msra.mxu1 %v2276_v45  ;;  %957 = vmatpush.msra.mxu3 %v2276_v45 }
 0x114   : > { %838 = vmatpush.msra.mxu1 %v2285_v11  ;;  %958 = vmatpush.msra.mxu3 %v2285_v11 }
 0x116   : > { %839 = vmatpush.msra.mxu1 %v2294_v46  ;;  %959 = vmatpush.msra.mxu3 %v2294_v46 }
 0x118   : > { %840 = vmatpush.msra.mxu1 %v2303_v13  ;;  %960 = vmatpush.msra.mxu3 %v2303_v13 }
 0x11a   : > { %841 = vmatpush.msra.mxu1 %v2313_v47  ;;  %961 = vmatpush.msra.mxu3 %v2313_v47 }
 0x11c   : > { %842 = vmatpush.msra.mxu1 %v2324_v16  ;;  %962 = vmatpush.msra.mxu3 %v2324_v16 }
 0x11e   : > { %843 = vmatpush.msra.mxu1 %v2333_v17  ;;  %963 = vmatpush.msra.mxu3 %v2333_v17 }
 0x120   : > { %844 = vmatpush.msra.mxu1 %v2340_v48  ;;  %964 = vmatpush.msra.mxu3 %v2340_v48 }
 0x13c   : > { %v562_v49 = vpop.f32.mrf.mxu0 }
 0x13d   : > { %v563_v50 = vadd.f32 %v2381_v18, %v562_v49 }
 0x13f   : > { %v568_v51 = vmax.f32 %v563_v50, 0.0 }
 0x141   : > { %605 = vmatmul.f32.vlgmr.msrb.gmra.mxu1 %v568_v51 }
 0x142   : > { %1069 = vmatpush.msrb.mxu1 %v2199_v36  ;;  %v685_v52 = vpop.f32.mrf.mxu2 }
 0x143   : > { %v686_v53 = vadd.f32 %v2381_v18, %v685_v52 }
 0x144   : > { %1070 = vmatpush.msrb.mxu1 %v2206_v40  ;;  %v565_v54 = vpop.f32.mrf.mxu0 }
 0x145   : > { %v691_v55 = vmax.f32 %v686_v53, 0.0  ;;  %v566_v56 = vadd.f32 %v2381_v18, %v565_v54 }
 0x146   : > { %1071 = vmatpush.msrb.mxu1 %v2217_v3 }
 0x147   : > { %v569_v57 = vmax.f32 %v566_v56, 0.0  ;;  %725 = vmatmul.f32.vlgmr.msrb.gmra.mxu3 %v691_v55 }
 0x148   : > { %1072 = vmatpush.msrb.mxu1 %v2232_v4  ;;  %1189 = vmatpush.msrb.mxu3 %v2199_v36 }
 0x149   : > { %608 = vmatmul.f32.gmra.mxu1 %v569_v57 }
 0x14a   : > { %1073 = vmatpush.msrb.mxu1 %v2239_v6  ;;  %1190 = vmatpush.msrb.mxu3 %v2206_v40  ;;  %v688_v58 = vpop.f32.mrf.mxu2 }
 0x14b   : > { %v689_v59 = vadd.f32 %v2381_v18, %v688_v58 }
 0x14c   : > { %1074 = vmatpush.msrb.mxu1 %v2248_v7  ;;  %1191 = vmatpush.msrb.mxu3 %v2217_v3  ;;  %v805_v60 = vpop.f32.mrf.mxu0 }
 0x14d   : > { %v692_v61 = vmax.f32 %v689_v59, 0.0  ;;  %v806_v62 = vadd.f32 %v2381_v18, %v805_v60 }
 0x14e   : > { %1075 = vmatpush.msrb.mxu1 %v2257_v8  ;;  %1192 = vmatpush.msrb.mxu3 %v2232_v4 }
 0x14f   : > { %v811_v63 = vmax.f32 %v806_v62, 0.0  ;;  %728 = vmatmul.f32.gmra.mxu3 %v692_v61 }
 0x150   : > { %1076 = vmatpush.msrb.mxu1 %v2266_v9  ;;  %1193 = vmatpush.msrb.mxu3 %v2239_v6 }
 0x151   : > { %845 = vmatmul.f32.vlgmr.msra.gmra.mxu1 %v811_v63 }
 0x152   : > { %1077 = vmatpush.msrb.mxu1 %v2276_v45  ;;  %1194 = vmatpush.msrb.mxu3 %v2248_v7  ;;  %v925_v0 = vpop.f32.mrf.mxu2 }
 0x153   : > { %v926_v2 = vadd.f32 %v2381_v18, %v925_v0 }
 0x154   : > { %1078 = vmatpush.msrb.mxu1 %v2285_v11  ;;  %1195 = vmatpush.msrb.mxu3 %v2257_v8  ;;  %v808_v5 = vpop.f32.mrf.mxu0 }
 0x155   : > { %v931_v19 = vmax.f32 %v926_v2, 0.0  ;;  %v809_v20 = vadd.f32 %v2381_v18, %v808_v5 }
 0x156   : > { %1079 = vmatpush.msrb.mxu1 %v2294_v46  ;;  %1196 = vmatpush.msrb.mxu3 %v2266_v9 }
 0x157   : > { %v812_v21 = vmax.f32 %v809_v20, 0.0  ;;  %965 = vmatmul.f32.vlgmr.msra.gmra.mxu3 %v931_v19 }
 0x158   : > { %1080 = vmatpush.msrb.mxu1 %v2303_v13  ;;  %1197 = vmatpush.msrb.mxu3 %v2276_v45 }
 0x159   : > { %848 = vmatmul.f32.gmra.mxu1 %v812_v21 }
 0x15a   : > { %1081 = vmatpush.msrb.mxu1 %v2313_v47  ;;  %1198 = vmatpush.msrb.mxu3 %v2285_v11  ;;  %v928_v22 = vpop.f32.mrf.mxu2 }
 0x15b   : > { %v929_v23 = vadd.f32 %v2381_v18, %v928_v22 }
 0x15c   : > { %1082 = vmatpush.msrb.mxu1 %v2324_v16  ;;  %1199 = vmatpush.msrb.mxu3 %v2294_v46  ;;  %v1045_v25 = vpop.f32.mrf.mxu0 }
 0x15d   : > { %v932_v24 = vmax.f32 %v929_v23, 0.0  ;;  %v1046_v26 = vadd.f32 %v2381_v18, %v1045_v25 }
 0x15e   : > { %1083 = vmatpush.msrb.mxu1 %v2333_v17  ;;  %1200 = vmatpush.msrb.mxu3 %v2303_v13 }
 0x15f   : > { %968 = vmatmul.f32.gmra.mxu3 %v932_v24  ;;  %v1051_v27 = vmax.f32 %v1046_v26, 0.0 }
 0x160   : > { %1084 = vmatpush.msrb.mxu1 %v2340_v48  ;;  %1201 = vmatpush.msrb.mxu3 %v2313_v47 }
 0x161   : > { %1085 = vmatmul.f32.vlgmr.msrb.gmra.mxu1 %v1051_v27 }
 0x162   : > { %1309 = vmatpush.msra.mxu1 %v2199_v36  ;;  %1202 = vmatpush.msrb.mxu3 %v2324_v16  ;;  %v1165_v28 = vpop.f32.mrf.mxu2 }
 0x163   : > { %v1166_v29 = vadd.f32 %v2381_v18, %v1165_v28 }
 0x164   : > { %1310 = vmatpush.msra.mxu1 %v2206_v40  ;;  %1203 = vmatpush.msrb.mxu3 %v2333_v17  ;;  %v1048_v30 = vpop.f32.mrf.mxu0 }
 0x165   : > { %v1171_v31 = vmax.f32 %v1166_v29, 0.0  ;;  %v1049_v32 = vadd.f32 %v2381_v18, %v1048_v30 }
 0x166   : > { %1311 = vmatpush.msra.mxu1 %v2217_v3  ;;  %1204 = vmatpush.msrb.mxu3 %v2340_v48 }
 0x167   : > { %v1052_v33 = vmax.f32 %v1049_v32, 0.0  ;;  %1205 = vmatmul.f32.vlgmr.msrb.gmra.mxu3 %v1171_v31 }
 0x168   : > { %1484 = vmatpush.msra.mxu3 %v2199_v36  ;;  %1312 = vmatpush.msra.mxu1 %v2232_v4 }
 0x169   : > { %1088 = vmatmul.f32.gmra.mxu1 %v1052_v33 }
 0x16a   : > { %1485 = vmatpush.msra.mxu3 %v2206_v40  ;;  %1313 = vmatpush.msra.mxu1 %v2239_v6  ;;  %v1168_v34 = vpop.f32.mrf.mxu2 }
 0x16b   : > { %v1169_v35 = vadd.f32 %v2381_v18, %v1168_v34 }
 0x16c   : > { %1486 = vmatpush.msra.mxu3 %v2217_v3  ;;  %1314 = vmatpush.msra.mxu1 %v2248_v7 }
 0x16d   : > { %v1172_v37 = vmax.f32 %v1169_v35, 0.0 }
 0x16e   : > { %1487 = vmatpush.msra.mxu3 %v2232_v4  ;;  %1315 = vmatpush.msra.mxu1 %v2257_v8 }
 0x16f   : > { %1208 = vmatmul.f32.gmra.mxu3 %v1172_v37 }
 0x170   : > { %1488 = vmatpush.msra.mxu3 %v2239_v6  ;;  %1316 = vmatpush.msra.mxu1 %v2266_v9 }
 0x172   : > { %1489 = vmatpush.msra.mxu3 %v2248_v7  ;;  %1317 = vmatpush.msra.mxu1 %v2276_v45 }
 0x174   : > { %1490 = vmatpush.msra.mxu3 %v2257_v8  ;;  %1318 = vmatpush.msra.mxu1 %v2285_v11 }
 0x176   : > { %1491 = vmatpush.msra.mxu3 %v2266_v9  ;;  %1319 = vmatpush.msra.mxu1 %v2294_v46 }
 0x178   : > { %1492 = vmatpush.msra.mxu3 %v2276_v45  ;;  %1320 = vmatpush.msra.mxu1 %v2303_v13 }
 0x17a   : > { %1493 = vmatpush.msra.mxu3 %v2285_v11  ;;  %1321 = vmatpush.msra.mxu1 %v2313_v47 }
 0x17c   : > { %v1285_v38 = vpop.f32.mrf.mxu0  ;;  %1494 = vmatpush.msra.mxu3 %v2294_v46  ;;  %1322 = vmatpush.msra.mxu1 %v2324_v16 }
 0x17d   : > { %v1286_v39 = vadd.f32 %v2381_v18, %v1285_v38 }
 0x17e   : > { %1495 = vmatpush.msra.mxu3 %v2303_v13  ;;  %1323 = vmatpush.msra.mxu1 %v2333_v17 }
 0x17f   : > { %v1291_v41 = vmax.f32 %v1286_v39, 0.0 }
 0x180   : > { %1496 = vmatpush.msra.mxu3 %v2313_v47  ;;  %1324 = vmatpush.msra.mxu1 %v2340_v48 }
 0x181   : > { %1325 = vmatmul.f32.vlgmr.msra.gmra.mxu1 %v1291_v41 }
 0x182   : > { %v1288_v36 = vpop.f32.mrf.mxu2  ;;  %1497 = vmatpush.msra.mxu3 %v2324_v16 }
 0x183   : > { %v1289_v40 = vadd.f32 %v2381_v18, %v1288_v36 }
 0x184   : > { %1498 = vmatpush.msra.mxu3 %v2333_v17 }
 0x185   : > { %v1292_v42 = vmax.f32 %v1289_v40, 0.0 }
 0x186   : > { %1499 = vmatpush.msra.mxu3 %v2340_v48 }
 0x187   : > { %1328 = vmatmul.f32.vlgmr.msra.gmra.mxu3 %v1292_v42 }
 0x1be   : > { %v606_v3 = vpop.f32.mrf.mxu1 }
 0x1bf   : > { %v607_v43 = vadd.f32 %v1545_v1, %v606_v3 }
 0x1c1   : > { %612 = vmax.xlane.f32.xlu0 %v607_v43 }
 0x1c6   : > { %v609_v44 = vpop.f32.mrf.mxu1 }
 0x1c7   : > { %v610_v4 = vadd.f32 %v1545_v1, %v609_v44 }
 0x1c9   : > { %614 = vmax.xlane.f32.xlu0 %v610_v4 }
 0x1ca   : > { %v726_v6 = vpop.f32.mrf.mxu3 }
 0x1cb   : > { %v727_v7 = vadd.f32 %v1545_v1, %v726_v6 }
 0x1cd   : > { %732 = vmax.xlane.f32.xlu1 %v727_v7 }
 0x1ce   : > { %v846_v8 = vpop.f32.mrf.mxu1 }
 0x1cf   : > { %v847_v9 = vadd.f32 %v1545_v1, %v846_v8 }
 0x1d1   : > { %852 = vmax.xlane.f32.xlu2 %v847_v9 }
 0x1d2   : > { %v729_v10 = vpop.f32.mrf.mxu3 }
 0x1d3   : > { %v730_v45 = vadd.f32 %v1545_v1, %v729_v10 }
 0x1d5   : > { %734 = vmax.xlane.f32.xlu1 %v730_v45 }
 0x1d6   : > { %v849_v11 = vpop.f32.mrf.mxu1 }
 0x1d7   : > { %v850_v12 = vadd.f32 %v1545_v1, %v849_v11 }
 0x1d9   : > { %854 = vmax.xlane.f32.xlu2 %v850_v12 }
 0x1da   : > { %v966_v46 = vpop.f32.mrf.mxu3 }
 0x1db   : > { %v967_v13 = vadd.f32 %v1545_v1, %v966_v46 }
 0x1dd   : > { %972 = vmax.xlane.f32.xlu0 %v967_v13 }
 0x1de   : > { %v1086_v14 = vpop.f32.mrf.mxu1 }
 0x1df   : > { %v1087_v47 = vadd.f32 %v1545_v1, %v1086_v14 }
 0x1e1   : > { %1092 = vmax.xlane.f32.xlu2 %v1087_v47 }
 0x1e2   : > { %v969_v15 = vpop.f32.mrf.mxu3 }
 0x1e3   : > { %v2464_v16 = vadd.f32 %v1545_v1, %v969_v15 }
 0x1e5   : > { %974 = vmax.xlane.f32.xlu1 %v2464_v16 }
 0x1e6   : > { %v1089_v17 = vpop.f32.mrf.mxu1 }
 0x1e7   : > { %v2467_v48 = vadd.f32 %v1545_v1, %v1089_v17 }
 0x1e9   : > { %1094 = vmax.xlane.f32.xlu0 %v2467_v48 }
 0x1ea   : > { %v1206_v18 = vpop.f32.mrf.mxu3 }
 0x1eb   : > { %v2470_v49 = vadd.f32 %v1545_v1, %v1206_v18 }
 0x1ed   : > { %1212 = vmax.xlane.f32.xlu1 %v2470_v49 }
 0x1f2   : > { %v1209_v50 = vpop.f32.mrf.mxu3 }
 0x1f3   : > { %v2473_v51 = vadd.f32 %v1545_v1, %v1209_v50 }
 0x1f5   : > { %1214 = vmax.xlane.f32.xlu2 %v2473_v51 }
 0x1fe   : > { %v1326_v52 = vpop.f32.mrf.mxu1 }
 0x1ff   : > { %v2476_v53 = vadd.f32 %v1545_v1, %v1326_v52 }
 0x201   : > { %1332 = vmax.xlane.f32.xlu0 %v2476_v53 }
 0x20a   : > { %v1329_v54 = vpop.f32.mrf.mxu3 }
 0x20b   : > { %v2479_v55 = vadd.f32 %v1545_v1, %v1329_v54 }
 0x20d   : > { %1334 = vmax.xlane.f32.xlu1 %v2479_v55 }
 0x234   : > { %v613_v56 = vpop.xlane.xlu0 %612 }
 0x235   : > { %v616_v57 = vsub.f32 %v607_v43, %v613_v56 }
 0x237   : > { %v618_v58 = vmul.f32 1.442695, %v616_v57 }
 0x239   : > { %1546 = vpow2.f32 %v618_v58 }
 0x23c   : > { %v615_v59 = vpop.xlane.xlu0 %614 }
 0x23d   : > { %v617_v60 = vsub.f32 %v610_v4, %v615_v59 }
 0x23f   : > { %v2482_v61 = vpop.eup %1546  ;;  %v620_v62 = vmul.f32 1.442695, %v617_v60 }
 0x240   : > { %v733_v63 = vpop.xlane.xlu1 %732  ;;  %622 = vadd.xlane.f32.xlu2 %v2482_v61 }
 0x241   : > { %1548 = vpow2.f32 %v620_v62  ;;  %v736_v0 = vsub.f32 %v727_v7, %v733_v63 }
 0x243   : > { %v738_v2 = vmul.f32 1.442695, %v736_v0 }
 0x244   : > { %v853_v5 = vpop.xlane.xlu2 %852 }
 0x245   : > { %1550 = vpow2.f32 %v738_v2  ;;  %v856_v19 = vsub.f32 %v847_v9, %v853_v5 }
 0x247   : > { %v2485_v20 = vpop.eup %1548  ;;  %v858_v21 = vmul.f32 1.442695, %v856_v19 }
 0x248   : > { %v735_v22 = vpop.xlane.xlu1 %734  ;;  %624 = vadd.xlane.f32.xlu0 %v2485_v20 }
 0x249   : > { %1552 = vpow2.f32 %v858_v21  ;;  %v737_v23 = vsub.f32 %v730_v45, %v735_v22 }
 0x24b   : > { %v2488_v24 = vpop.eup %1550  ;;  %v740_v25 = vmul.f32 1.442695, %v737_v23 }
 0x24c   : > { %742 = vadd.xlane.f32.xlu1 %v2488_v24  ;;  %v855_v26 = vpop.xlane.xlu2 %854 }
 0x24d   : > { %1554 = vpow2.f32 %v740_v25  ;;  %v857_v27 = vsub.f32 %v850_v12, %v855_v26 }
 0x24f   : > { %v2491_v28 = vpop.eup %1552  ;;  %v860_v29 = vmul.f32 1.442695, %v857_v27 }
 0x250   : > { %862 = vadd.xlane.f32.xlu0 %v2491_v28  ;;  %v973_v30 = vpop.xlane.xlu0 %972 }
 0x251   : > { %1556 = vpow2.f32 %v860_v29  ;;  %v976_v31 = vsub.f32 %v967_v13, %v973_v30 }
 0x253   : > { %v2494_v32 = vpop.eup %1554  ;;  %v978_v33 = vmul.f32 1.442695, %v976_v31 }
 0x254   : > { %744 = vadd.xlane.f32.xlu2 %v2494_v32  ;;  %v1093_v34 = vpop.xlane.xlu2 %1092 }
 0x255   : > { %1558 = vpow2.f32 %v978_v33  ;;  %v1096_v35 = vsub.f32 %v1087_v47, %v1093_v34 }
 0x257   : > { %v2497_v37 = vpop.eup %1556  ;;  %v1098_v38 = vmul.f32 1.442695, %v1096_v35 }
 0x258   : > { %v975_v39 = vpop.xlane.xlu1 %974  ;;  %864 = vadd.xlane.f32.xlu1 %v2497_v37 }
 0x259   : > { %v977_v41 = vsub.f32 %v2464_v16, %v975_v39  ;;  %1560 = vpow2.f32 %v1098_v38 }
 0x25b   : > { %v2501_v36 = vpop.eup %1558  ;;  %v980_v40 = vmul.f32 1.442695, %v977_v41 }
 0x25c   : > { %982 = vadd.xlane.f32.xlu2 %v2501_v36  ;;  %v1095_v42 = vpop.xlane.xlu0 %1094 }
 0x25d   : > { %1562 = vpow2.f32 %v980_v40  ;;  %v1097_v1 = vsub.f32 %v2467_v48, %v1095_v42 }
 0x25f   : > { %v2505_v3 = vpop.eup %1560  ;;  %v1100_v43 = vmul.f32 1.442695, %v1097_v1 }
 0x260   : > { %v1213_v44 = vpop.xlane.xlu1 %1212  ;;  %1102 = vadd.xlane.f32.xlu1 %v2505_v3 }
 0x261   : > { %1564 = vpow2.f32 %v1100_v43  ;;  %v1216_v4 = vsub.f32 %v2470_v49, %v1213_v44 }
 0x263   : > { %v2509_v6 = vpop.eup %1562  ;;  %v1218_v7 = vmul.f32 1.442695, %v1216_v4 }
 0x264   : > { %984 = vadd.xlane.f32.xlu0 %v2509_v6 }
 0x265   : > { %1566 = vpow2.f32 %v1218_v7 }
 0x267   : > { %v2512_v8 = vpop.eup %1564 }
 0x268   : > { %v1215_v9 = vpop.xlane.xlu2 %1214  ;;  %1104 = vadd.xlane.f32.xlu2 %v2512_v8 }
 0x269   : > { %v1217_v10 = vsub.f32 %v2473_v51, %v1215_v9 }
 0x26b   : > { %v2516_v45 = vpop.eup %1566  ;;  %v1220_v11 = vmul.f32 1.442695, %v1217_v10 }
 0x26c   : > { %1222 = vadd.xlane.f32.xlu0 %v2516_v45 }
 0x26d   : > { %1568 = vpow2.f32 %v1220_v11 }
 0x273   : > { %v2519_v46 = vpop.eup %1568 }
 0x274   : > { %v1333_v12 = vpop.xlane.xlu0 %1332  ;;  %1224 = vadd.xlane.f32.xlu1 %v2519_v46 }
 0x275   : > { %v1336_v13 = vsub.f32 %v2476_v53, %v1333_v12 }
 0x277   : > { %v1338_v14 = vmul.f32 1.442695, %v1336_v13 }
 0x279   : > { %1570 = vpow2.f32 %v1338_v14 }
 0x27f   : > { %v2523_v47 = vpop.eup %1570 }
 0x280   : > { %v1335_v15 = vpop.xlane.xlu1 %1334  ;;  %1342 = vadd.xlane.f32.xlu2 %v2523_v47 }
 0x281   : > { %v1337_v16 = vsub.f32 %v2479_v55, %v1335_v15 }
 0x283   : > { %v1340_v17 = vmul.f32 1.442695, %v1337_v16 }
 0x285   : > { %1572 = vpow2.f32 %v1340_v17 }
 0x28b   : > { %v2527_v48 = vpop.eup %1572 }
 0x28c   : > { %1344 = vadd.xlane.f32.xlu0 %v2527_v48 }
 0x2b3   : > { %v623_v18 = vpop.xlane.xlu2 %622 }
 0x2b4   : > { %1574 = vrcp.f32 %v623_v18 }
 0x2ba   : > { %v1575_v49 = vpop.eup %1574 }
 0x2bb   : > { %v628_v50 = vmul.f32 %v1575_v49, %v623_v18  ;;  %v625_v51 = vpop.xlane.xlu0 %624 }
 0x2bc   : > { %1576 = vrcp.f32 %v625_v51 }
 0x2bd   : > { %v630_v52 = vsub.f32 2.0, %v628_v50 }
 0x2bf   : > { %v632_v53 = vmul.f32 %v1575_v49, %v630_v52  ;;  %v743_v54 = vpop.xlane.xlu1 %742 }
 0x2c0   : > { %1578 = vrcp.f32 %v743_v54 }
 0x2c1   : > { %v634_v55 = vmul.f32 %v2482_v61, %v632_v53 }
 0x2c2   : > { %v1577_v56 = vpop.eup %1576 }
 0x2c3   : > { %v636_v57 = vpack.c.bf16 %v634_v55, %v634_v55  ;;  %v629_v58 = vmul.f32 %v1577_v56, %v625_v51  ;;  %v863_v59 = vpop.xlane.xlu0 %862 }
 0x2c4   : > { %1580 = vrcp.f32 %v863_v59 }
 0x2c5   : > { %638 = vst [vmem:[%s2534_s20] sm:$0xf] %v636_v57  ;;  %v631_v60 = vsub.f32 2.0, %v629_v58 }
 0x2c6   : > { %v1579_v62 = vpop.eup %1578 }
 0x2c7   : > { %v633_v63 = vmul.f32 %v1577_v56, %v631_v60  ;;  %v748_v0 = vmul.f32 %v1579_v62, %v743_v54  ;;  %v745_v2 = vpop.xlane.xlu2 %744 }
 0x2c8   : > { %1582 = vrcp.f32 %v745_v2 }
 0x2c9   : > { %v635_v5 = vmul.f32 %v2485_v20, %v633_v63  ;;  %v750_v19 = vsub.f32 2.0, %v748_v0 }
 0x2ca   : > { %v1581_v61 = vpop.eup %1580 }
 0x2cb   : > { %v637_v21 = vpack.c.bf16 %v635_v5, %v635_v5  ;;  %v752_v22 = vmul.f32 %v1579_v62, %v750_v19  ;;  %v868_v23 = vmul.f32 %v1581_v61, %v863_v59  ;;  %v865_v25 = vpop.xlane.xlu1 %864 }
 0x2cc   : > { %1584 = vrcp.f32 %v865_v25 }
 0x2cd   : > { %639 = vst [vmem:[%s2534_s20 + $0x1c] sm:$0xf] %v637_v21  ;;  %v754_v26 = vmul.f32 %v2488_v24, %v752_v22  ;;  %v870_v27 = vsub.f32 2.0, %v868_v23 }
 0x2ce   : > { %v1583_v29 = vpop.eup %1582 }
 0x2cf   : > { %v756_v30 = vpack.c.bf16 %v754_v26, %v754_v26  ;;  %v872_v31 = vmul.f32 %v1581_v61, %v870_v27  ;;  %v749_v33 = vmul.f32 %v1583_v29, %v745_v2  ;;  %v983_v34 = vpop.xlane.xlu2 %982 }
 0x2d0   : > { %1586 = vrcp.f32 %v983_v34 }
 0x2d1   : > { %758 = vst [vmem:[%s2534_s20 + $0x4] sm:$0xf] %v756_v30  ;;  %v874_v20 = vmul.f32 %v2491_v28, %v872_v31  ;;  %v751_v35 = vsub.f32 2.0, %v749_v33 }
 0x2d2   : > { %v1585_v38 = vpop.eup %1584 }
 0x2d3   : > { %v876_v39 = vpack.c.bf16 %v874_v20, %v874_v20  ;;  %v753_v41 = vmul.f32 %v1583_v29, %v751_v35  ;;  %v869_v40 = vmul.f32 %v1585_v38, %v865_v25  ;;  %v1103_v42 = vpop.xlane.xlu1 %1102 }
 0x2d4   : > { %1588 = vrcp.f32 %v1103_v42 }
 0x2d5   : > { %878 = vst [vmem:[%s2534_s20 + $0x8] sm:$0xf] %v876_v39  ;;  %v755_v24 = vmul.f32 %v2494_v32, %v753_v41  ;;  %v871_v1 = vsub.f32 2.0, %v869_v40 }
 0x2d6   : > { %v1587_v43 = vpop.eup %1586 }
 0x2d7   : > { %v757_v44 = vpack.c.bf16 %v755_v24, %v755_v24  ;;  %v873_v4 = vmul.f32 %v1585_v38, %v871_v1  ;;  %v988_v7 = vmul.f32 %v1587_v43, %v983_v34  ;;  %v985_v9 = vpop.xlane.xlu0 %984 }
 0x2d8   : > { %1590 = vrcp.f32 %v985_v9 }
 0x2d9   : > { %759 = vst [vmem:[%s2534_s20 + $0x20] sm:$0xf] %v757_v44  ;;  %v875_v28 = vmul.f32 %v2497_v37, %v873_v4  ;;  %v990_v10 = vsub.f32 2.0, %v988_v7 }
 0x2da   : > { %v1589_v11 = vpop.eup %1588 }
 0x2db   : > { %v877_v12 = vpack.c.bf16 %v875_v28, %v875_v28  ;;  %v992_v13 = vmul.f32 %v1587_v43, %v990_v10  ;;  %v1108_v14 = vmul.f32 %v1589_v11, %v1103_v42  ;;  %v1105_v15 = vpop.xlane.xlu2 %1104 }
 0x2dc   : > { %1592 = vrcp.f32 %v1105_v15 }
 0x2dd   : > { %879 = vst [vmem:[%s2534_s20 + $0x24] sm:$0xf] %v877_v12  ;;  %v994_v32 = vmul.f32 %v2501_v36, %v992_v13  ;;  %v1110_v17 = vsub.f32 2.0, %v1108_v14 }
 0x2de   : > { %v1591_v16 = vpop.eup %1590 }
 0x2df   : > { %v996_v18 = vpack.c.bf16 %v994_v32, %v994_v32  ;;  %v989_v49 = vmul.f32 %v1591_v16, %v985_v9  ;;  %v1112_v50 = vmul.f32 %v1589_v11, %v1110_v17  ;;  %v1223_v51 = vpop.xlane.xlu0 %1222 }
 0x2e0   : > { %1594 = vrcp.f32 %v1223_v51 }
 0x2e1   : > { %998 = vst [vmem:[%s2534_s20 + $0xc] sm:$0xf] %v996_v18  ;;  %v991_v37 = vsub.f32 2.0, %v989_v49  ;;  %v1114_v52 = vmul.f32 %v2505_v3, %v1112_v50 }
 0x2e2   : > { %v1593_v53 = vpop.eup %1592 }
 0x2e3   : > { %v993_v54 = vmul.f32 %v1591_v16, %v991_v37  ;;  %v1116_v55 = vpack.c.bf16 %v1114_v52, %v1114_v52  ;;  %v1109_v56 = vmul.f32 %v1593_v53, %v1105_v15 }
 0x2e5   : > { %v995_v36 = vmul.f32 %v2509_v6, %v993_v54  ;;  %1118 = vst [vmem:[%s2534_s20 + $0x10] sm:$0xf] %v1116_v55  ;;  %v1111_v57 = vsub.f32 2.0, %v1109_v56 }
 0x2e6   : > { %v1595_v58 = vpop.eup %1594 }
 0x2e7   : > { %v997_v59 = vpack.c.bf16 %v995_v36, %v995_v36  ;;  %v1113_v60 = vmul.f32 %v1593_v53, %v1111_v57  ;;  %v1228_v62 = vmul.f32 %v1595_v58, %v1223_v51  ;;  %v1225_v63 = vpop.xlane.xlu1 %1224 }
 0x2e8   : > { %1596 = vrcp.f32 %v1225_v63 }
 0x2e9   : > { %999 = vst [vmem:[%s2534_s20 + $0x28] sm:$0xf] %v997_v59  ;;  %v1115_v0 = vmul.f32 %v2512_v8, %v1113_v60  ;;  %v1230_v3 = vsub.f32 2.0, %v1228_v62 }
 0x2eb   : > { %v1117_v2 = vpack.c.bf16 %v1115_v0, %v1115_v0  ;;  %v1232_v5 = vmul.f32 %v1595_v58, %v1230_v3 }
 0x2ed   : > { %1119 = vst [vmem:[%s2534_s20 + $0x2c] sm:$0xf] %v1117_v2  ;;  %v1234_v19 = vmul.f32 %v2516_v45, %v1232_v5 }
 0x2ee   : > { %v1597_v6 = vpop.eup %1596 }
 0x2ef   : > { %v1236_v61 = vpack.c.bf16 %v1234_v19, %v1234_v19  ;;  %v1229_v21 = vmul.f32 %v1597_v6, %v1225_v63 }
 0x2f1   : > { %1238 = vst [vmem:[%s2534_s20 + $0x14] sm:$0xf] %v1236_v61  ;;  %v1231_v22 = vsub.f32 2.0, %v1229_v21 }
 0x2f3   : > { %v1343_v23 = vpop.xlane.xlu2 %1342  ;;  %v1233_v25 = vmul.f32 %v1597_v6, %v1231_v22 }
 0x2f4   : > { %1598 = vrcp.f32 %v1343_v23 }
 0x2f5   : > { %v1235_v26 = vmul.f32 %v2519_v46, %v1233_v25 }
 0x2f7   : > { %v1237_v8 = vpack.c.bf16 %v1235_v26, %v1235_v26 }
 0x2f9   : > { %1239 = vst [vmem:[%s2534_s20 + $0x30] sm:$0xf] %v1237_v8 }
 0x2fa   : > { %v1599_v27 = vpop.eup %1598 }
 0x2fb   : > { %v1348_v29 = vmul.f32 %v1599_v27, %v1343_v23 }
 0x2fd   : > { %v1350_v30 = vsub.f32 2.0, %v1348_v29 }
 0x2ff   : > { %v1352_v31 = vmul.f32 %v1599_v27, %v1350_v30  ;;  %v1345_v45 = vpop.xlane.xlu0 %1344 }
 0x300   : > { %1600 = vrcp.f32 %v1345_v45 }
 0x301   : > { %v1354_v33 = vmul.f32 %v2523_v47, %v1352_v31 }
 0x303   : > { %v1356_v34 = vpack.c.bf16 %v1354_v33, %v1354_v33 }
 0x305   : > { %1358 = vst [vmem:[%s2534_s20 + $0x18] sm:$0xf] %v1356_v34 }
 0x306   : > { %v1601_v20 = vpop.eup %1600 }
 0x307   : > { %v1349_v35 = vmul.f32 %v1601_v20, %v1345_v45 }
 0x309   : > { %v1351_v46 = vsub.f32 2.0, %v1349_v35 }
 0x30b   : > { %v1353_v38 = vmul.f32 %v1601_v20, %v1351_v46 }
 0x30d   : > { %v1355_v39 = vmul.f32 %v2527_v48, %v1353_v38 }
 0x30f   : > { %v1357_v47 = vpack.c.bf16 %v1355_v39, %v1355_v39 }
 0x311   : > { %1359 = vst [vmem:[%s2534_s20 + $0x34] sm:$0xf] %v1357_v47 }
 0x312   : > { %1629 = shalt.err (!%p1626_p3)
}
 0x313   : > { %s1666_s17 = smov 448   ;;  %s1667_s20 = smov 28  }
 0x314   : > { %1503 = dma.vmem_to_hbm [thread:$0]  (%p1751_p5), %s1375_s25, 896, %s1377_s26, %s1361_s9, %s1666_s17, %s1666_s17, %s1667_s20  }
 0x315 PF: > { %p1509_p4 = scmp.ge.s32.totalorder %s1664_s30, 2  ;;  %s1391_s22 = sand.u32 1, %s1652_s27  }
 0x316   : > { %s1392_s24 = scalar_lea.sflag [#allocation4], %s1391_s22 }
 0x317   : > { %p1506_p7 = pnand %p1509_p4, %p1755_p6 }
 0x319   : > { %p1507_p8 = pneg %p1506_p7 }
 0x31b   : > { %1647 = dma.done.wait (%p1507_p8), %s1392_s24, 896  }
 0x31c   : > { %1649 = vsyncadd (%p1507_p8), %s1392_s24, 4294966400  ;;  %p18_p9 = scmp.ge.s32.totalorder %s1738_s11, 4   ;;  %s2609_s27 = smov %s1656_s28 }
 0x31d   : > { %s2610_s28 = smov %s1660_s29  ;;  %s2611_s29 = smov %s1749_s14 }
 0x31e   : > { %s2612_s30 = smov %s1738_s11  ;;  %20 = sbr.rel (!%p18_p9) target bundleno = 3 (0x3), region = 90 }
 0x323   :  { %1398 = vsyncpa [#allocation4], 1 }
 0x324   :  { %1400 = vsyncpa [#allocation4 + $0x1], 1 }

</bundles_post_ra>
